<compile_context>
chip_gen: v6e
topology: v6e:2x2x1
jax: 0.10.0
libtpu: 0.0.40
codegen_flags: <defaults>
</compile_context>

<pallas_src>
import functools

import jax
import jax.numpy as jnp
from jax import lax
from jax.experimental import pallas as pl
from jax.experimental.pallas import tpu as pltpu


def _fold_rows_to8(x, rows, w):
    """Sum an (rows, w) f32 value over 8-row groups -> (8, w) partial.

    Pure VALU adds on sublane-aligned static slices; a ragged tail (rows % 8,
    only possible for tiny single-tile inputs) is zero-padded via a small concat.
    """
    nfull, rem = divmod(rows, 8)
    acc = None
    for k in range(nfull):
        blk = x[k * 8:(k + 1) * 8]
        acc = blk if acc is None else acc + blk
    if rem:
        tail = jnp.concatenate(
            [x[nfull * 8:], jnp.zeros((8 - rem, w), x.dtype)], axis=0)
        acc = tail if acc is None else acc + tail
    return acc


def _continuity_loss_kernel(cur_ref, halo_ref, o_ref,
                            ext_abs_ref, ext_log_ref,
                            shf_abs_ref, shf_log_ref, acc_ref, *,
                            neighbor, H, W, tile_h, halo):
    """One row-tile per grid step.

    cur_ref     : (tile_h, W)        rows [gt*tile_h, (gt+1)*tile_h) of X
    halo_ref    : (halo,  W)         first `halo` rows of the next tile (clamped
                                     / garbage for the last & phantom tiles;
                                     always masked there)
    o_ref       : (1, 8, 128)        per-core partial loss slab (broadcast scalar)
    ext_*_ref   : (tile_h+halo, W)   |x| and log|x| of the extended tile
    shf_*_ref   : (tile_h+halo, W)   per-j lane-rolled copies of ext_*
    acc_ref     : (8, W)             f32 partial sum, persistent across row tiles
    """
    c = pl.program_id(0)                    # core split (v7x: one per TensorCore)
    t = pl.program_id(1)                    # row-tile index within this core
    nt_per_core = pl.num_programs(1)
    gt = c * nt_per_core + t                # logical global row-tile index

    @pl.when(t == 0)
    def _init():
        acc_ref[...] = jnp.zeros_like(acc_ref)

    # ---- abs / log once per tile (single EUP pass); no concatenate copy ----
    cur = cur_ref[...].astype(jnp.float32)              # (tile_h, W)
    nxt = halo_ref[...].astype(jnp.float32)             # (halo,  W)
    a_abs = jnp.abs(cur)
    a_log = jnp.log(a_abs)
    h_abs = jnp.abs(nxt)
    h_log = jnp.log(h_abs)
    ext_abs_ref[:tile_h, :] = a_abs
    ext_abs_ref[tile_h:, :] = h_abs
    ext_log_ref[:tile_h, :] = a_log
    ext_log_ref[tile_h:, :] = h_log

    # ---- masks, hoisted out of the term loops ----
    row = lax.broadcasted_iota(jnp.int32, (tile_h, W), 0) + gt * tile_h
    i_list = [i for i in range(1, neighbor) if i < H]    # i >= H: empty slice -> 0
    row_ok = [row < (H - i) for i in i_list]
    col8 = lax.broadcasted_iota(jnp.int32, (8, W), 1)
    zero_tile = jnp.zeros((tile_h, W), jnp.float32)
    zero8 = jnp.zeros((8, W), jnp.float32)

    # ---- term loops: j outer (one lane roll per j), i inner (row-offset slice) --
    acc8 = zero8
    if i_list:
        for j in range(neighbor):
            if j > 0 and j >= W:
                continue                    # empty column slice -> contributes 0
            if j == 0:
                src_abs, src_log = ext_abs_ref, ext_log_ref
            else:
                # lane (axis=1) roll once per j, stashed to VMEM scratch
                shf_abs_ref[...] = pltpu.roll(ext_abs_ref[...], W - j, axis=1)
                shf_log_ref[...] = pltpu.roll(ext_log_ref[...], W - j, axis=1)
                src_abs, src_log = shf_abs_ref, shf_log_ref

            acc8_j = zero8
            for idx, i in enumerate(i_list):
                # row shift = plain row-offset slice of the scratch (no roll)
                b_abs = src_abs[i:i + tile_h, :]
                b_log = src_log[i:i + tile_h, :]
                # |a*b|*log|a*b| = (|a||b|)*(log|a|+log|b|): one EUP pass reused.
                plogp = (a_abs * b_abs) * (a_log + b_log)
                # Mask AFTER forming plogp so valid-region NaNs (exact zeros)
                # are preserved like the reference; fold rows into (8, W).
                masked = jnp.where(row_ok[idx], plogp, zero_tile)
                acc8_j = acc8_j + _fold_rows_to8(masked, tile_h, W)
            if j == 0:
                acc8 = acc8 + acc8_j
            else:
                acc8 = acc8 + jnp.where(col8 < (W - j), acc8_j, zero8)

    acc_ref[...] += acc8

    @pl.when(t == nt_per_core - 1)
    def _finalize():
        # One tiny (8, W) reduction per core; negate and divide by the row count
        # (X.data.shape[0] in the PyTorch code).
        total = -jnp.sum(acc_ref[...]) / jnp.float32(H)
        o_ref[...] = jnp.broadcast_to(total, o_ref.shape)


def continuity_loss(x, neighbor, *, tile_h=None):
    """Pallas wrapper. x: (H, W) array, neighbor: Python int. Returns shape (1,)."""
    x = jnp.asarray(x)
    H, W = x.shape
    neighbor = int(neighbor)

    # Halo rows so partner values up to (neighbor-1) rows ahead are in-tile.
    halo = 8 * pl.cdiv(max(neighbor - 1, 1), 8)

    # Generation-aware VMEM budget (v5e/v6e: 128 MiB physical, v7x: 64 MiB).
    try:
        vmem_cap = int(pltpu.get_tpu_info().vmem_capacity_bytes)
    except Exception:  # no info available -> conservative default
        vmem_cap = 64 * 1024 * 1024
    big_vmem = vmem_cap >= 100 * 1024 * 1024

    if tile_h is None:
        budget = (16 if big_vmem else 8) * 1024 * 1024
        # ~12 f32 tile-height-sized live arrays (ext/rolled scratch, double-
        # buffered input blocks, per-term temporaries).
        tile_h = budget // (12 * 4 * max(W, 1))
        tile_h = max(halo, min(512, (tile_h // halo) * halo))
    tile_h = int(tile_h)
    if H <= tile_h or H < 8:
        tile_h = H                                   # single full-height tile
    else:
        tile_h = max(halo, (min(tile_h, H) // halo) * halo)

    nt = pl.cdiv(H, tile_h)
    nblk_halo = pl.cdiv(H, halo)
    blocks_per_tile = max(1, tile_h // halo)

    # Split row tiles across two TensorCores (v7x); harmless on 1-TC chips.
    ncs = 2 if nt >= 2 else 1
    nt_per_core = pl.cdiv(nt, ncs)

    def cur_map(c, t):
        # Phantom steps (gt >= nt) are clamped to the last tile; the kernel masks
        # them fully via the logical global row index, so no double counting.
        return (jnp.minimum(c * nt_per_core + t, nt - 1), 0)

    def halo_map(c, t):
        # First `halo` rows of the next tile, clamped for the last/phantom tiles
        # (the clamped content is never used unmasked).
        return (jnp.minimum((c * nt_per_core + t + 1) * blocks_per_tile,
                            nblk_halo - 1), 0)

    kernel = functools.partial(
        _continuity_loss_kernel,
        neighbor=neighbor, H=H, W=W, tile_h=tile_h, halo=halo)

    n_terms = max(neighbor - 1, 0) * max(neighbor, 1)
    out = pl.pallas_call(
        kernel,
        out_shape=jax.ShapeDtypeStruct((ncs, 8, 128), jnp.float32),
        grid=(ncs, nt_per_core),
        in_specs=[
            pl.BlockSpec((tile_h, W), cur_map),
            pl.BlockSpec((halo, W), halo_map),
        ],
        out_specs=pl.BlockSpec((1, 8, 128), lambda c, t: (c, 0, 0)),
        scratch_shapes=[
            pltpu.VMEM((tile_h + halo, W), jnp.float32),   # ext |x|
            pltpu.VMEM((tile_h + halo, W), jnp.float32),   # ext log|x|
            pltpu.VMEM((tile_h + halo, W), jnp.float32),   # per-j rolled |x|
            pltpu.VMEM((tile_h + halo, W), jnp.float32),   # per-j rolled log|x|
            pltpu.VMEM((8, W), jnp.float32),               # persistent partial sum
        ],
        compiler_params=pltpu.CompilerParams(
            dimension_semantics=("parallel", "arbitrary"),
            vmem_limit_bytes=(64 if big_vmem else 32) * 1024 * 1024,
        ),
        cost_estimate=pl.CostEstimate(
            flops=int(7 * n_terms * H * W),
            transcendentals=int(H * W + nt * halo * W),
            bytes_accessed=int((H * W + nt * halo * W) * x.dtype.itemsize
                               + ncs * 8 * 128 * 4),
        ),
    )(x, x)
    # Per-core partials already carry the -1/H factor; just sum them.
    return jnp.sum(out[:, 0, 0]).reshape(1)


def _continuity_loss_ref(x, neighbor):
    """Pure-JAX reference mirroring the PyTorch code."""
    x = x.astype(jnp.float32)
    H, W = x.shape
    loss = jnp.zeros((1,), jnp.float32)
    for i in range(neighbor):
        for j in range(neighbor):
            if i == 0 and j == 0:
                continue
            if i == 0 and j > 0:
                continue  # empty slice in the original code -> contributes 0
            if j == 0:
                corr = x[: H - i, :] * x[i:, :]
            else:
                corr = x[: H - i, : W - j] * x[i:, j:]
            corr = jnp.abs(corr)
            loss = loss - jnp.sum(corr * jnp.log(corr))
    return loss / H


if __name__ == "__main__":
    key = jax.random.PRNGKey(0)
    k1, k2, k3 = jax.random.split(key, 3)

    # Case 1: multi-tile path (two 32-row tiles, one per core split), neighbor=3.
    x1 = jax.random.normal(k1, (64, 256), dtype=jnp.float32)
    out1 = jax.block_until_ready(continuity_loss(x1, 3, tile_h=32))
    ref1 = _continuity_loss_ref(x1, 3)
    assert out1.shape == (1,)
    assert jnp.allclose(out1, ref1, rtol=5e-3, atol=5e-3), (out1, ref1)

    # Case 2: single-tile path with default tiling.
    x2 = jax.random.normal(k2, (16, 128), dtype=jnp.float32)
    out2 = jax.block_until_ready(continuity_loss(x2, 3))
    ref2 = _continuity_loss_ref(x2, 3)
    assert jnp.allclose(out2, ref2, rtol=5e-3, atol=5e-3), (out2, ref2)

    # Case 3: larger neighbor, three 16-row tiles (odd count -> phantom step).
    x3 = jax.random.normal(k3, (48, 256), dtype=jnp.float32)
    out3 = jax.block_until_ready(continuity_loss(x3, 4, tile_h=16))
    ref3 = _continuity_loss_ref(x3, 4)
    assert jnp.allclose(out3, ref3, rtol=5e-3, atol=5e-3), (out3, ref3)

    print("KERNEL_OK")
</pallas_src>

<mosaic_0001>
module attributes {stable_mosaic.version = 11 : i64} {
  func.func @_continuity_loss_kernel(%arg0: i32, %arg1: i32, %arg2: memref<32x256xf32, #tpu.memory_space<vmem>>, %arg3: memref<8x256xf32, #tpu.memory_space<vmem>>, %arg4: memref<1x8x128xf32, #tpu.memory_space<vmem>>, %arg5: memref<40x256xf32, #tpu.memory_space<vmem>>, %arg6: memref<40x256xf32, #tpu.memory_space<vmem>>, %arg7: memref<40x256xf32, #tpu.memory_space<vmem>>, %arg8: memref<40x256xf32, #tpu.memory_space<vmem>>, %arg9: memref<8x256xf32, #tpu.memory_space<vmem>>) attributes {dimension_semantics = [#tpu.dimension_semantics<parallel>, #tpu.dimension_semantics<arbitrary>], iteration_bounds = array<i64: 2, 1>, scalar_prefetch = 0 : i64, scratch_operands = 5 : i64, tpu.core_type = #tpu.core_type<tc>, window_params = [{transform_indices = @transform_0, window_bounds = array<i64: 32, 256>}, {transform_indices = @transform_1, window_bounds = array<i64: 8, 256>}, {transform_indices = @transform_2, window_bounds = array<i64: 1, 8, 128>}]} {
    %c1_i32 = arith.constant 1 : i32
    %0 = arith.muli %arg0, %c1_i32 : i32
    %1 = arith.addi %0, %arg1 : i32
    %c0_i32 = arith.constant 0 : i32
    %2 = arith.cmpi eq, %arg1, %c0_i32 : i32
    %3 = arith.extui %2 : i1 to i32
    %c0_i32_0 = arith.constant 0 : i32
    %4 = arith.cmpi ne, %3, %c0_i32_0 : i32
    scf.if %4 {
      %cst_60 = arith.constant 0.000000e+00 : f32
      %137 = vector.broadcast %cst_60 : f32 to vector<8x256xf32>
      %c0_61 = arith.constant 0 : index
      %c0_62 = arith.constant 0 : index
      %138 = vector.load %arg9[%c0_61, %c0_62] : memref<8x256xf32, #tpu.memory_space<vmem>>, vector<8x256xf32>
      tpu.vector_store %arg9[%c0_61, %c0_62], %137 {strides = array<i32>} : memref<8x256xf32, #tpu.memory_space<vmem>>, vector<8x256xf32>,
    } else {
    }
    %c0 = arith.constant 0 : index
    %c0_1 = arith.constant 0 : index
    %5 = vector.load %arg2[%c0, %c0_1] : memref<32x256xf32, #tpu.memory_space<vmem>>, vector<32x256xf32>
    %c0_2 = arith.constant 0 : index
    %c0_3 = arith.constant 0 : index
    %6 = vector.load %arg3[%c0_2, %c0_3] : memref<8x256xf32, #tpu.memory_space<vmem>>, vector<8x256xf32>
    %7 = math.absf %5 : vector<32x256xf32>
    %8 = math.log %7 : vector<32x256xf32>
    %9 = math.absf %6 : vector<8x256xf32>
    %10 = math.log %9 : vector<8x256xf32>
    %c0_4 = arith.constant 0 : index
    %c0_5 = arith.constant 0 : index
    %11 = vector.load %arg5[%c0_4, %c0_5] : memref<40x256xf32, #tpu.memory_space<vmem>>, vector<32x256xf32>
    tpu.vector_store %arg5[%c0_4, %c0_5], %7 {strides = array<i32>} : memref<40x256xf32, #tpu.memory_space<vmem>>, vector<32x256xf32>,
    %c32 = arith.constant 32 : index
    %c0_6 = arith.constant 0 : index
    %12 = vector.load %arg5[%c32, %c0_6] : memref<40x256xf32, #tpu.memory_space<vmem>>, vector<8x256xf32>
    tpu.vector_store %arg5[%c32, %c0_6], %9 {strides = array<i32>} : memref<40x256xf32, #tpu.memory_space<vmem>>, vector<8x256xf32>,
    %c0_7 = arith.constant 0 : index
    %c0_8 = arith.constant 0 : index
    %13 = vector.load %arg6[%c0_7, %c0_8] : memref<40x256xf32, #tpu.memory_space<vmem>>, vector<32x256xf32>
    tpu.vector_store %arg6[%c0_7, %c0_8], %8 {strides = array<i32>} : memref<40x256xf32, #tpu.memory_space<vmem>>, vector<32x256xf32>,
    %c32_9 = arith.constant 32 : index
    %c0_10 = arith.constant 0 : index
    %14 = vector.load %arg6[%c32_9, %c0_10] : memref<40x256xf32, #tpu.memory_space<vmem>>, vector<8x256xf32>
    tpu.vector_store %arg6[%c32_9, %c0_10], %10 {strides = array<i32>} : memref<40x256xf32, #tpu.memory_space<vmem>>, vector<8x256xf32>,
    %15 = tpu.iota {dimensions = array<i32: 0>} : vector<32x256xi32>
    %c32_i32 = arith.constant 32 : i32
    %16 = arith.muli %1, %c32_i32 : i32
    %17 = vector.broadcast %16 : i32 to vector<32x256xi32>
    %18 = arith.addi %15, %17 : vector<32x256xi32>
    %c63_i32 = arith.constant 63 : i32
    %19 = vector.broadcast %c63_i32 : i32 to vector<32x256xi32>
    %20 = arith.cmpi slt, %18, %19 : vector<32x256xi32>
    %c62_i32 = arith.constant 62 : i32
    %21 = vector.broadcast %c62_i32 : i32 to vector<32x256xi32>
    %22 = arith.cmpi slt, %18, %21 : vector<32x256xi32>
    %23 = tpu.iota {dimensions = array<i32: 1>} : vector<8x256xi32>
    %cst = arith.constant 0.000000e+00 : f32
    %24 = vector.broadcast %cst : f32 to vector<32x256xf32>
    %cst_11 = arith.constant 0.000000e+00 : f32
    %25 = vector.broadcast %cst_11 : f32 to vector<8x256xf32>
    %c1 = arith.constant 1 : index
    %c0_12 = arith.constant 0 : index
    %26 = vector.load %arg5[%c1, %c0_12] : memref<40x256xf32, #tpu.memory_space<vmem>>, vector<32x256xf32>
    %c1_13 = arith.constant 1 : index
    %c0_14 = arith.constant 0 : index
    %27 = vector.load %arg6[%c1_13, %c0_14] : memref<40x256xf32, #tpu.memory_space<vmem>>, vector<32x256xf32>
    %28 = arith.mulf %7, %26 : vector<32x256xf32>
    %29 = arith.addf %8, %27 : vector<32x256xf32>
    %30 = arith.mulf %28, %29 : vector<32x256xf32>
    %31 = arith.select %20, %30, %24 : vector<32x256xi1>, vector<32x256xf32>
    %32 = vector.extract_strided_slice %31 {offsets = [0, 0], sizes = [8, 256], strides = [1, 1]} : vector<32x256xf32> to vector<8x256xf32>
    %33 = vector.extract_strided_slice %31 {offsets = [8, 0], sizes = [8, 256], strides = [1, 1]} : vector<32x256xf32> to vector<8x256xf32>
    %34 = arith.addf %32, %33 : vector<8x256xf32>
    %35 = vector.extract_strided_slice %31 {offsets = [16, 0], sizes = [8, 256], strides = [1, 1]} : vector<32x256xf32> to vector<8x256xf32>
    %36 = arith.addf %34, %35 : vector<8x256xf32>
    %37 = vector.extract_strided_slice %31 {offsets = [24, 0], sizes = [8, 256], strides = [1, 1]} : vector<32x256xf32> to vector<8x256xf32>
    %38 = arith.addf %36, %37 : vector<8x256xf32>
    %39 = arith.addf %25, %38 : vector<8x256xf32>
    %c2 = arith.constant 2 : index
    %c0_15 = arith.constant 0 : index
    %40 = vector.load %arg5[%c2, %c0_15] : memref<40x256xf32, #tpu.memory_space<vmem>>, vector<32x256xf32>
    %c2_16 = arith.constant 2 : index
    %c0_17 = arith.constant 0 : index
    %41 = vector.load %arg6[%c2_16, %c0_17] : memref<40x256xf32, #tpu.memory_space<vmem>>, vector<32x256xf32>
    %42 = arith.mulf %7, %40 : vector<32x256xf32>
    %43 = arith.addf %8, %41 : vector<32x256xf32>
    %44 = arith.mulf %42, %43 : vector<32x256xf32>
    %45 = arith.select %22, %44, %24 : vector<32x256xi1>, vector<32x256xf32>
    %46 = vector.extract_strided_slice %45 {offsets = [0, 0], sizes = [8, 256], strides = [1, 1]} : vector<32x256xf32> to vector<8x256xf32>
    %47 = vector.extract_strided_slice %45 {offsets = [8, 0], sizes = [8, 256], strides = [1, 1]} : vector<32x256xf32> to vector<8x256xf32>
    %48 = arith.addf %46, %47 : vector<8x256xf32>
    %49 = vector.extract_strided_slice %45 {offsets = [16, 0], sizes = [8, 256], strides = [1, 1]} : vector<32x256xf32> to vector<8x256xf32>
    %50 = arith.addf %48, %49 : vector<8x256xf32>
    %51 = vector.extract_strided_slice %45 {offsets = [24, 0], sizes = [8, 256], strides = [1, 1]} : vector<32x256xf32> to vector<8x256xf32>
    %52 = arith.addf %50, %51 : vector<8x256xf32>
    %53 = arith.addf %39, %52 : vector<8x256xf32>
    %54 = arith.addf %25, %53 : vector<8x256xf32>
    %c0_18 = arith.constant 0 : index
    %c0_19 = arith.constant 0 : index
    %55 = vector.load %arg5[%c0_18, %c0_19] : memref<40x256xf32, #tpu.memory_space<vmem>>, vector<40x256xf32>
    %c255_i32 = arith.constant 255 : i32
    %56 = tpu.dynamic_rotate %55 by %c255_i32 dim 1 : vector<40x256xf32>, i32 -> vector<40x256xf32>
    %c0_20 = arith.constant 0 : index
    %c0_21 = arith.constant 0 : index
    %57 = vector.load %arg7[%c0_20, %c0_21] : memref<40x256xf32, #tpu.memory_space<vmem>>, vector<40x256xf32>
    tpu.vector_store %arg7[%c0_20, %c0_21], %56 {strides = array<i32>} : memref<40x256xf32, #tpu.memory_space<vmem>>, vector<40x256xf32>,
    %c0_22 = arith.constant 0 : index
    %c0_23 = arith.constant 0 : index
    %58 = vector.load %arg6[%c0_22, %c0_23] : memref<40x256xf32, #tpu.memory_space<vmem>>, vector<40x256xf32>
    %c255_i32_24 = arith.constant 255 : i32
    %59 = tpu.dynamic_rotate %58 by %c255_i32_24 dim 1 : vector<40x256xf32>, i32 -> vector<40x256xf32>
    %c0_25 = arith.constant 0 : index
    %c0_26 = arith.constant 0 : index
    %60 = vector.load %arg8[%c0_25, %c0_26] : memref<40x256xf32, #tpu.memory_space<vmem>>, vector<40x256xf32>
    tpu.vector_store %arg8[%c0_25, %c0_26], %59 {strides = array<i32>} : memref<40x256xf32, #tpu.memory_space<vmem>>, vector<40x256xf32>,
    %c1_27 = arith.constant 1 : index
    %c0_28 = arith.constant 0 : index
    %61 = vector.load %arg7[%c1_27, %c0_28] : memref<40x256xf32, #tpu.memory_space<vmem>>, vector<32x256xf32>
    %c1_29 = arith.constant 1 : index
    %c0_30 = arith.constant 0 : index
    %62 = vector.load %arg8[%c1_29, %c0_30] : memref<40x256xf32, #tpu.memory_space<vmem>>, vector<32x256xf32>
    %63 = arith.mulf %7, %61 : vector<32x256xf32>
    %64 = arith.addf %8, %62 : vector<32x256xf32>
    %65 = arith.mulf %63, %64 : vector<32x256xf32>
    %66 = arith.select %20, %65, %24 : vector<32x256xi1>, vector<32x256xf32>
    %67 = vector.extract_strided_slice %66 {offsets = [0, 0], sizes = [8, 256], strides = [1, 1]} : vector<32x256xf32> to vector<8x256xf32>
    %68 = vector.extract_strided_slice %66 {offsets = [8, 0], sizes = [8, 256], strides = [1, 1]} : vector<32x256xf32> to vector<8x256xf32>
    %69 = arith.addf %67, %68 : vector<8x256xf32>
    %70 = vector.extract_strided_slice %66 {offsets = [16, 0], sizes = [8, 256], strides = [1, 1]} : vector<32x256xf32> to vector<8x256xf32>
    %71 = arith.addf %69, %70 : vector<8x256xf32>
    %72 = vector.extract_strided_slice %66 {offsets = [24, 0], sizes = [8, 256], strides = [1, 1]} : vector<32x256xf32> to vector<8x256xf32>
    %73 = arith.addf %71, %72 : vector<8x256xf32>
    %74 = arith.addf %25, %73 : vector<8x256xf32>
    %c2_31 = arith.constant 2 : index
    %c0_32 = arith.constant 0 : index
    %75 = vector.load %arg7[%c2_31, %c0_32] : memref<40x256xf32, #tpu.memory_space<vmem>>, vector<32x256xf32>
    %c2_33 = arith.constant 2 : index
    %c0_34 = arith.constant 0 : index
    %76 = vector.load %arg8[%c2_33, %c0_34] : memref<40x256xf32, #tpu.memory_space<vmem>>, vector<32x256xf32>
    %77 = arith.mulf %7, %75 : vector<32x256xf32>
    %78 = arith.addf %8, %76 : vector<32x256xf32>
    %79 = arith.mulf %77, %78 : vector<32x256xf32>
    %80 = arith.select %22, %79, %24 : vector<32x256xi1>, vector<32x256xf32>
    %81 = vector.extract_strided_slice %80 {offsets = [0, 0], sizes = [8, 256], strides = [1, 1]} : vector<32x256xf32> to vector<8x256xf32>
    %82 = vector.extract_strided_slice %80 {offsets = [8, 0], sizes = [8, 256], strides = [1, 1]} : vector<32x256xf32> to vector<8x256xf32>
    %83 = arith.addf %81, %82 : vector<8x256xf32>
    %84 = vector.extract_strided_slice %80 {offsets = [16, 0], sizes = [8, 256], strides = [1, 1]} : vector<32x256xf32> to vector<8x256xf32>
    %85 = arith.addf %83, %84 : vector<8x256xf32>
    %86 = vector.extract_strided_slice %80 {offsets = [24, 0], sizes = [8, 256], strides = [1, 1]} : vector<32x256xf32> to vector<8x256xf32>
    %87 = arith.addf %85, %86 : vector<8x256xf32>
    %88 = arith.addf %74, %87 : vector<8x256xf32>
    %c255_i32_35 = arith.constant 255 : i32
    %89 = vector.broadcast %c255_i32_35 : i32 to vector<8x256xi32>
    %90 = arith.cmpi slt, %23, %89 : vector<8x256xi32>
    %91 = arith.select %90, %88, %25 : vector<8x256xi1>, vector<8x256xf32>
    %92 = arith.addf %54, %91 : vector<8x256xf32>
    %c0_36 = arith.constant 0 : index
    %c0_37 = arith.constant 0 : index
    %93 = vector.load %arg5[%c0_36, %c0_37] : memref<40x256xf32, #tpu.memory_space<vmem>>, vector<40x256xf32>
    %c254_i32 = arith.constant 254 : i32
    %94 = tpu.dynamic_rotate %93 by %c254_i32 dim 1 : vector<40x256xf32>, i32 -> vector<40x256xf32>
    %c0_38 = arith.constant 0 : index
    %c0_39 = arith.constant 0 : index
    %95 = vector.load %arg7[%c0_38, %c0_39] : memref<40x256xf32, #tpu.memory_space<vmem>>, vector<40x256xf32>
    tpu.vector_store %arg7[%c0_38, %c0_39], %94 {strides = array<i32>} : memref<40x256xf32, #tpu.memory_space<vmem>>, vector<40x256xf32>,
    %c0_40 = arith.constant 0 : index
    %c0_41 = arith.constant 0 : index
    %96 = vector.load %arg6[%c0_40, %c0_41] : memref<40x256xf32, #tpu.memory_space<vmem>>, vector<40x256xf32>
    %c254_i32_42 = arith.constant 254 : i32
    %97 = tpu.dynamic_rotate %96 by %c254_i32_42 dim 1 : vector<40x256xf32>, i32 -> vector<40x256xf32>
    %c0_43 = arith.constant 0 : index
    %c0_44 = arith.constant 0 : index
    %98 = vector.load %arg8[%c0_43, %c0_44] : memref<40x256xf32, #tpu.memory_space<vmem>>, vector<40x256xf32>
    tpu.vector_store %arg8[%c0_43, %c0_44], %97 {strides = array<i32>} : memref<40x256xf32, #tpu.memory_space<vmem>>, vector<40x256xf32>,
    %c1_45 = arith.constant 1 : index
    %c0_46 = arith.constant 0 : index
    %99 = vector.load %arg7[%c1_45, %c0_46] : memref<40x256xf32, #tpu.memory_space<vmem>>, vector<32x256xf32>
    %c1_47 = arith.constant 1 : index
    %c0_48 = arith.constant 0 : index
    %100 = vector.load %arg8[%c1_47, %c0_48] : memref<40x256xf32, #tpu.memory_space<vmem>>, vector<32x256xf32>
    %101 = arith.mulf %7, %99 : vector<32x256xf32>
    %102 = arith.addf %8, %100 : vector<32x256xf32>
    %103 = arith.mulf %101, %102 : vector<32x256xf32>
    %104 = arith.select %20, %103, %24 : vector<32x256xi1>, vector<32x256xf32>
    %105 = vector.extract_strided_slice %104 {offsets = [0, 0], sizes = [8, 256], strides = [1, 1]} : vector<32x256xf32> to vector<8x256xf32>
    %106 = vector.extract_strided_slice %104 {offsets = [8, 0], sizes = [8, 256], strides = [1, 1]} : vector<32x256xf32> to vector<8x256xf32>
    %107 = arith.addf %105, %106 : vector<8x256xf32>
    %108 = vector.extract_strided_slice %104 {offsets = [16, 0], sizes = [8, 256], strides = [1, 1]} : vector<32x256xf32> to vector<8x256xf32>
    %109 = arith.addf %107, %108 : vector<8x256xf32>
    %110 = vector.extract_strided_slice %104 {offsets = [24, 0], sizes = [8, 256], strides = [1, 1]} : vector<32x256xf32> to vector<8x256xf32>
    %111 = arith.addf %109, %110 : vector<8x256xf32>
    %112 = arith.addf %25, %111 : vector<8x256xf32>
    %c2_49 = arith.constant 2 : index
    %c0_50 = arith.constant 0 : index
    %113 = vector.load %arg7[%c2_49, %c0_50] : memref<40x256xf32, #tpu.memory_space<vmem>>, vector<32x256xf32>
    %c2_51 = arith.constant 2 : index
    %c0_52 = arith.constant 0 : index
    %114 = vector.load %arg8[%c2_51, %c0_52] : memref<40x256xf32, #tpu.memory_space<vmem>>, vector<32x256xf32>
    %115 = arith.mulf %7, %113 : vector<32x256xf32>
    %116 = arith.addf %8, %114 : vector<32x256xf32>
    %117 = arith.mulf %115, %116 : vector<32x256xf32>
    %118 = arith.select %22, %117, %24 : vector<32x256xi1>, vector<32x256xf32>
    %119 = vector.extract_strided_slice %118 {offsets = [0, 0], sizes = [8, 256], strides = [1, 1]} : vector<32x256xf32> to vector<8x256xf32>
    %120 = vector.extract_strided_slice %118 {offsets = [8, 0], sizes = [8, 256], strides = [1, 1]} : vector<32x256xf32> to vector<8x256xf32>
    %121 = arith.addf %119, %120 : vector<8x256xf32>
    %122 = vector.extract_strided_slice %118 {offsets = [16, 0], sizes = [8, 256], strides = [1, 1]} : vector<32x256xf32> to vector<8x256xf32>
    %123 = arith.addf %121, %122 : vector<8x256xf32>
    %124 = vector.extract_strided_slice %118 {offsets = [24, 0], sizes = [8, 256], strides = [1, 1]} : vector<32x256xf32> to vector<8x256xf32>
    %125 = arith.addf %123, %124 : vector<8x256xf32>
    %126 = arith.addf %112, %125 : vector<8x256xf32>
    %c254_i32_53 = arith.constant 254 : i32
    %127 = vector.broadcast %c254_i32_53 : i32 to vector<8x256xi32>
    %128 = arith.cmpi slt, %23, %127 : vector<8x256xi32>
    %129 = arith.select %128, %126, %25 : vector<8x256xi1>, vector<8x256xf32>
    %130 = arith.addf %92, %129 : vector<8x256xf32>
    %c0_54 = arith.constant 0 : index
    %c0_55 = arith.constant 0 : index
    %131 = vector.load %arg9[%c0_54, %c0_55] : memref<8x256xf32, #tpu.memory_space<vmem>>, vector<8x256xf32>
    %132 = arith.addf %131, %130 : vector<8x256xf32>
    %c0_56 = arith.constant 0 : index
    %c0_57 = arith.constant 0 : index
    %133 = vector.load %arg9[%c0_56, %c0_57] : memref<8x256xf32, #tpu.memory_space<vmem>>, vector<8x256xf32>
    tpu.vector_store %arg9[%c0_56, %c0_57], %132 {strides = array<i32>} : memref<8x256xf32, #tpu.memory_space<vmem>>, vector<8x256xf32>,
    %c0_i32_58 = arith.constant 0 : i32
    %134 = arith.cmpi eq, %arg1, %c0_i32_58 : i32
    %135 = arith.extui %134 : i1 to i32
    %c0_i32_59 = arith.constant 0 : i32
    %136 = arith.cmpi ne, %135, %c0_i32_59 : i32
    scf.if %136 {
      %c0_60 = arith.constant 0 : index
      %c0_61 = arith.constant 0 : index
      %137 = vector.load %arg9[%c0_60, %c0_61] : memref<8x256xf32, #tpu.memory_space<vmem>>, vector<8x256xf32>
      %138 = vector.shape_cast %137 : vector<8x256xf32> to vector<1x8x256xf32>
      %cst_62 = arith.constant dense<0.000000e+00> : vector<1xf32>
      %139 = vector.multi_reduction <add>, %138, %cst_62 [1, 2] : vector<1x8x256xf32> to vector<1xf32>
      %140 = vector.shape_cast %139 : vector<1xf32> to vector<1x1x1xf32>
      %141 = vector.extract %140[0, 0, 0] : f32 from vector<1x1x1xf32>
      %cst_63 = arith.constant 0.000000e+00 : f32
      %142 = arith.subf %cst_63, %141 : f32
      %cst_64 = arith.constant 6.400000e+01 : f32
      %143 = arith.divf %142, %cst_64 : f32
      %144 = vector.broadcast %143 : f32 to vector<1x8x128xf32>
      %c0_65 = arith.constant 0 : index
      %c0_66 = arith.constant 0 : index
      %c0_67 = arith.constant 0 : index
      %145 = vector.load %arg4[%c0_65, %c0_66, %c0_67] : memref<1x8x128xf32, #tpu.memory_space<vmem>>, vector<1x8x128xf32>
      tpu.vector_store %arg4[%c0_65, %c0_66, %c0_67], %144 {strides = array<i32>} : memref<1x8x128xf32, #tpu.memory_space<vmem>>, vector<1x8x128xf32>,
    } else {
    }
    return
  }
  func.func @transform_0(%arg0: i32, %arg1: i32) -> (i32, i32) {
    %c1_i32 = arith.constant 1 : i32
    %0 = arith.muli %arg0, %c1_i32 : i32
    %1 = arith.addi %0, %arg1 : i32
    %c1_i32_0 = arith.constant 1 : i32
    %2 = arith.minsi %1, %c1_i32_0 : i32
    %c0_i32 = arith.constant 0 : i32
    %c0_i32_1 = arith.constant 0 : i32
    return %2, %c0_i32 : i32, i32
  }
  func.func @transform_1(%arg0: i32, %arg1: i32) -> (i32, i32) {
    %c1_i32 = arith.constant 1 : i32
    %0 = arith.muli %arg0, %c1_i32 : i32
    %1 = arith.addi %0, %arg1 : i32
    %c1_i32_0 = arith.constant 1 : i32
    %2 = arith.addi %1, %c1_i32_0 : i32
    %c4_i32 = arith.constant 4 : i32
    %3 = arith.muli %2, %c4_i32 : i32
    %c7_i32 = arith.constant 7 : i32
    %4 = arith.minsi %3, %c7_i32 : i32
    %c0_i32 = arith.constant 0 : i32
    %c0_i32_1 = arith.constant 0 : i32
    return %4, %c0_i32 : i32, i32
  }
  func.func @transform_2(%arg0: i32, %arg1: i32) -> (i32, i32, i32) {
    %c0_i32 = arith.constant 0 : i32
    %c0_i32_0 = arith.constant 0 : i32
    %c0_i32_1 = arith.constant 0 : i32
    return %arg0, %c0_i32, %c0_i32_0 : i32, i32, i32
  }
}

</mosaic_0001>

<bundles_post_ra>
// kernel: tpu_custom_call.1
= control target key start
LH: loop header
LB: loop body
LE: loop exit
PB: predicated region body
PF: predicated region fallthrough
CT: control target
= control target key end

     0   :  { %s2926_s0 = inlined_call_operand.hbm [shape: f32[64,256], index: 0, kind: input, shape index: {}]   ;;  %s2927_s1 = inlined_call_operand.hbm [shape: f32[64,256], index: 1, kind: input, shape index: {}]   ;;  %s2928_s2 = inlined_call_operand.hbm [shape: f32[2,8,128], index: 2, kind: output, shape index: {}]  }
   0x1   :  { %2936 = sst [smem:[#allocation18_spill]] %s2926_s0 }
   0x2   :  { %7 = vsyncpa [#allocation8], 0 }
   0x3   :  { %9 = vsyncpa [#allocation8 + $0x1], 0 }
   0x4   :  { %10 = vsyncpa [#allocation11], 0 }
   0x5   :  { %12 = vsyncpa [#allocation11 + $0x1], 0 }
   0x6   :  { %13 = vsyncpa [#allocation9], 0 }
   0x7   :  { %15 = vsyncpa [#allocation9 + $0x1], 0  ;;  %s1810_s9 = smov 0   ;;  %s1812_s10 = smov 0  }
   0x8   :  { %s1814_s11 = smov 0   ;;  %s1816_s12 = smov 0  }
   0x9   :  { %s1818_s13 = smov 0   ;;  %s1820_s14 = smov 0  }
   0xa   :  { %s1822_s15 = smov 0   ;;  %s1824_s16 = smov 0  }
   0xb   :  { %s1826_s17 = smov 0   ;;  %s1828_s18 = smov 0  }
   0xc   :  { %s1830_s19 = smov 0   ;;  %s1832_s20 = smov 0  }
   0xd LB: > { %2937 = sst [smem:[#allocation16_spill]] %s1782_s19  ;;  %s33_s21 = sadd.s32 1, %s1782_s19  ;;  %s1786_s20 = sphi %s1832_s20, %s21_s20   ;;  %s1782_s19 = sphi %s1830_s19, %s2961_s19   ;;  %s1778_s18 = sphi %s1828_s18, %s2960_s18   ;;  %s1774_s17 = sphi %s1826_s17, %s2970_s17   ;;  %s1770_s16 = sphi %s1824_s16, %s2969_s16   ;;  %s1766_s15 = sphi %s1822_s15, %s2968_s15   ;;  %s1762_s14 = sphi %s1820_s14, %s2967_s14   ;;  %s1758_s13 = sphi %s1818_s13, %s2966_s13   ;;  %s1754_s12 = sphi %s1816_s12, %s2965_s12   ;;  %s1750_s11 = sphi %s1814_s11, %s2964_s11   ;;  %s1746_s10 = sphi %s1812_s10, %s2963_s10   ;;  %s1742_s9 = sphi %s1810_s9, %s2962_s9  }
   0xe   : > { %p38_p0 = scmp.lt.s32.totalorder %s1782_s19, 1  ;;  %p35_p1 = scmp.ge.s32.totalorder %s33_s21, 2 }
   0xf   : > { %p53_p2 = scmp.ne.s32.totalorder %s1774_s17, %s1770_s16  ;;  %p54_p3 = scmp.eq.s32.totalorder %s1786_s20, 0 }
  0x10   : > { %s39_s22 = scalar_select %p38_p0, %s1782_s19, 1 }
  0x11   : > { %s2972_s21 = smov (%p35_p1, %s33_s21), 0  ;;  %s46_s23 = sadd.s32 1, %s1774_s17 }
  0x12   : > { %2938 = sst [smem:[#allocation17_spill]] %s2972_s21  ;;  %p41_p4 = scmp.lt.s32.totalorder %s2972_s21, 1 }
  0x13   : > { %p1882_p5 = por %p54_p3, %p53_p2  ;;  %p59_p6 = scmp.ne.s32.totalorder %s1770_s16, %s1766_s15 }
  0x14   : > { %s42_s25 = scalar_select %p41_p4, %s2972_s21, 1 }
  0x15   : > { %p2929_p8 = scmp.lt.s32.totalorder %s1786_s20, 2  ;;  %s145_s28 = sand.u32 1, %s1774_s17  }
  0x16   : > { %s43_s27 = ssub.s32 %s39_s22, %s42_s25  ;;  %s1415_s29 = sshll.u32 %s145_s28, 6 }
  0x17   : > { %p44_p9 = scmp.eq.s32.totalorder %s43_s27, 0  ;;  %s1437_s3 = sshll.u32 %s39_s22, 10 }
  0x18   : > { %s2940_s0 = sld [smem:[#allocation18_spill]]  ;;  %s149_s7 = scalar_lea.vmem [#allocation7], %s1415_s29 }
  0x19   : > { %s1895_s30 = scalar_select %p44_p9, %s1774_s17, %s46_s23  }
  0x1a   : > { %s160_s8 = sshll.u32 %s149_s7, 4  ;;  %p1904_p10 = pnand %p2929_p8, %p1882_p5  ;;  %s161_s8 = int_to_ptr.vmem [resolvable:$true] %s160_s8 }
  0x1b   : > { %p1423_p11 = scmp.ge.s32.totalorder %s1786_s20, 1  ;;  %s146_s25 = scalar_lea.sflag [#allocation8], %s145_s28 }
  0x1c   : > { %p1600_p12 = pneg %p1904_p10  ;;  %s1611_s23 = scalar_lea.vmem %s161_s8, 1024 }
  0x1d   : > { %p1612_p13 = scmp.ne.s32.totalorder %s161_s8, %s1611_s23  ;;  %s1788_s22 = smov [#allocation7]  }
  0x1e   : > { %s159_s6 = scalar_lea.hbm %s2940_s0, %s1437_s3  ;;  %s1616_s27 = sshll.u32 %s1788_s22, 4  ;;  %s1617_s27 = int_to_ptr.vmem [resolvable:$false] %s1616_s27 }
  0x1f   : > { %p1614_p0 = pnand %p1612_p13, %p1600_p12  ;;  %s1618_s29 = scalar_lea.vmem %s1617_s27, 2048 }
  0x20   : > { %p1619_p2 = scmp.lt.s32.totalorder %s161_s8, %s1617_s27  ;;  %p1620_p4 = scmp.lt.s32.totalorder %s1618_s29, %s1611_s23 }
  0x21   : > { %p1615_p1 = pneg %p1614_p0 }
  0x22   : > { %p1621_p9 = por %p1620_p4, %p1619_p2 }
  0x24   : > { %p1622_p5 = pnand %p1621_p9, %p1615_p1 }
  0x26   : > { %1625 = shalt.err (!%p1622_p5)
}
  0x27   : > { %s1789_s24 = smov 256   ;;  %s1790_s28 = smov 16  }
  0x28   : > { %1452 = dma.hbm_to_vmem [thread:$0]  (!%p1904_p10), %s159_s6, 1024, %s161_s8, %s146_s25, %s1789_s24, %s1789_s24, %s1790_s28  }
  0x29   : > { %s2942_s3 = ssub.s32 %s1782_s19, %s2972_s21  ;;  %p192_p13 = scmp.lt.s32.totalorder %s1786_s20, 3 }
  0x2a   : > { %p1916_p12 = scmp.eq.s32.totalorder %s2942_s3, 0  ;;  %s1409_s7 = sadd.s32 4294967295, %s1786_s20  }
  0x2b   : > { %p1923_p0 = pnand %p1423_p11, %p192_p13  ;;  %p1928_p1 = scmp.eq.s32.totalorder %s1409_s7, 0 }
  0x2c   : > { %s1432_s6 = sshll.u32 %s1782_s19, 2  ;;  %s1434_s25 = sshll.u32 %s2972_s21, 2 }
  0x2d   : > { %s1433_s8 = sadd.s32 4, %s1432_s6  ;;  %p1939_p10 = por %p1928_p1, %p59_p6 }
  0x2e   : > { %p72_p11 = scmp.lt.s32.totalorder %s1433_s8, 7  ;;  %s1410_s22 = sadd.s32 4294967294, %s1786_s20  }
  0x2f   : > { %s1435_s27 = sadd.s32 4, %s1434_s25  ;;  %s82_s29 = sadd.s32 1, %s1762_s14 }
  0x30   : > { %s2974_s8 = smov (!%p72_p11, %s1433_s8), 7  ;;  %p77_p2 = scmp.lt.s32.totalorder %s1435_s27, 7 }
  0x31   : > { %p89_p4 = scmp.ne.s32.totalorder %s1762_s14, %s1758_s13  ;;  %p95_p6 = scmp.ne.s32.totalorder %s1758_s13, %s1754_s12 }
  0x32   : > { %s2976_s27 = smov (!%p77_p2, %s1435_s27), 7  ;;  %s108_s24 = sadd.s32 1, %s1750_s11 }
  0x33   : > { %p1951_p9 = por %p95_p6, %p1928_p1  ;;  %s79_s28 = ssub.s32 %s2974_s8, %s2976_s27 }
  0x34   : > { %p118_p5 = scmp.ne.s32.totalorder %s1750_s11, %s1746_s10  ;;  %p80_p13 = scmp.eq.s32.totalorder %s79_s28, 0 }
  0x35   : > { %p119_p11 = scmp.eq.s32.totalorder %s1409_s7, 1  ;;  %p124_p2 = scmp.ne.s32.totalorder %s1746_s10, %s1742_s9 }
  0x36   : > { %s1961_s3 = scalar_select %p1916_p12, %s1750_s11, %s108_s24  }
  0x37   : > { %s1964_s6 = scalar_select %p80_p13, %s1762_s14, %s82_s29  }
  0x38   : > { %p1966_p7 = por %p119_p11, %p118_p5  ;;  %p125_p1 = scmp.eq.s32.totalorder %s1410_s22, 1 }
  0x39   : > { %s170_s12 = sand.u32 1, %s1762_s14   ;;  %p91_p6 = por %p89_p4, %p54_p3 }
  0x3a   : > { %s2948_s25 = scalar_select %p1966_p7, 1, 0 }
  0x3b   : > { %s1419_s26 = sshll.u32 %s170_s12, 4  ;;  %p1978_p8 = por %p125_p1, %p124_p2 }
  0x3c   : > { %s1440_s4 = sshll.u32 %s2974_s8, 8  ;;  %s174_s7 = scalar_lea.vmem [#allocation10], %s1419_s26 }
  0x3d   : > { %s2949_s27 = scalar_select %p1978_p8, 1, 0 }
  0x3e   : > { %s187_s24 = sshll.u32 %s174_s7, 4  ;;  %s185_s0 = scalar_lea.hbm %s2927_s1, %s1440_s4  ;;  %s188_s24 = int_to_ptr.vmem [resolvable:$true] %s187_s24 }
  0x3f   : > { %p2950_p12 = scmp.lt.s32.totalorder %s1786_s20, 2  ;;  %s171_s21 = scalar_lea.sflag [#allocation11], %s170_s12 }
  0x40   : > { %s1639_s19 = scalar_lea.vmem %s188_s24, 256  ;;  %s1791_s8 = smov [#allocation10]  }
  0x41   : > { %p1987_p5 = pnand %p2950_p12, %p91_p6  ;;  %p1640_p4 = scmp.ne.s32.totalorder %s188_s24, %s1639_s19 }
  0x42   : > { %s1644_s26 = sshll.u32 %s1791_s8, 4  ;;  %s1645_s26 = int_to_ptr.vmem [resolvable:$false] %s1644_s26 }
  0x43   : > { %p1628_p3 = pneg %p1987_p5  ;;  %s1646_s7 = scalar_lea.vmem %s1645_s26, 512 }
  0x44   : > { %p1647_p2 = scmp.lt.s32.totalorder %s188_s24, %s1645_s26  ;;  %p1648_p1 = scmp.lt.s32.totalorder %s1646_s7, %s1639_s19 }
  0x45   : > { %p1642_p13 = pnand %p1640_p4, %p1628_p3 }
  0x46   : > { %p1649_p8 = por %p1648_p1, %p1647_p2 }
  0x47   : > { %p1643_p11 = pneg %p1642_p13 }
  0x49   : > { %p1650_p7 = pnand %p1649_p8, %p1643_p11 }
  0x4b   : > { %1653 = shalt.err (!%p1650_p7)
}
  0x4c   : > { %1455 = dma.hbm_to_vmem [thread:$0]  (!%p1987_p5), %s185_s0, 256, %s188_s24, %s171_s21  }
  0x4d   : > { %196 = sbr.rel (%p1923_p0) target bundleno = 534 (0x216), region = 28  ;;  %s198_s12 = sand.u32 (!%p1923_p0), 1, %s1770_s16  }
  0x4e   : > { %s1424_s4 = sshll.u32 (!%p1923_p0), %s198_s12, 6  ;;  %s199_s29 = scalar_lea.sflag (!%p1923_p0), [#allocation8], %s198_s12 }
  0x4f   : > { %s1998_s28 = scalar_lea.vmem (!%p1923_p0), [#allocation7], %s1424_s4 }
  0x52   : > { %1729 = dma.done.wait (%p1939_p10), %s199_s29, 1024  }
  0x53   : > { %1731 = vsyncadd (%p1939_p10), %s199_s29, 4294966272  ;;  %s207_s19 = sand.u32 1, %s1758_s13  }
  0x54   : > { %s2005_s22 = sshll.u32 %s207_s19, 4  ;;  %s208_s0 = scalar_lea.sflag [#allocation11], %s207_s19 }
  0x55   : > { %s211_s21 = scalar_lea.vmem [#allocation10], %s2005_s22 }
  0x56   : > { %1733 = dma.done.wait (%p1951_p9), %s208_s0, 256  }
  0x57   : > { %1735 = vsyncadd (%p1951_p9), %s208_s0, 4294967040  ;;  %v257_v0 = vld [vmem:[%s1998_s28 + $0x20] sm:$0xff]  ;;  %v254_v2 = vld [vmem:[%s1998_s28 + $0x8] sm:$0xff]  ;;  %s1792_s5 = smov 127   ;;  %s1793_s23 = smov 126   ;;  %v313_v40 = vlaneseq  ;;  %vm365_vm0 = vcmask 1046528  }
  0x58   : > { %v253_v1 = vld [vmem:[%s1998_s28] sm:$0xff]  ;;  %v2015_v3 = vand.u32 2147483647, %v257_v0  ;;  %v2019_v5 = vand.u32 2147483647, %v254_v2  ;;  %v255_v6 = vld [vmem:[%s1998_s28 + $0x10] sm:$0xff] }
  0x59   : > { %v2017_v4 = vand.u32 2147483647, %v253_v1  ;;  %v258_v7 = vld [vmem:[%s1998_s28 + $0x28] sm:$0xff]  ;;  %v256_v8 = vld [vmem:[%s1998_s28 + $0x18] sm:$0xff]  ;;  %v2031_v9 = vand.u32 2147483647, %v255_v6 }
  0x5a   : > { %297 = vst [vmem:[#allocation2 + $0x48] sm:$0xff] %v2015_v3  ;;  %587 = vrot.lane.b32.xlu1 %v2015_v3, %s1792_s5  ;;  %294 = vst [vmem:[#allocation2] sm:$0xff] %v2019_v5  ;;  %1562 = vlog2.f32 %v2015_v3  ;;  %v260_v10 = vld [vmem:[%s1998_s28 + $0x38] sm:$0xff]  ;;  %v2038_v12 = vand.u32 2147483647, %v258_v7  ;;  %v259_v16 = vld [vmem:[%s1998_s28 + $0x30] sm:$0xff] }
  0x5b   : > { %293 = vst [vmem:[#allocation2 + $0x30] sm:$0xff] %v2017_v4  ;;  %583 = vrot.lane.b32.xlu0 %v2017_v4, %s1792_s5  ;;  %v262_v11 = vld [vmem:[%s211_s21 + $0x8] sm:$0xff]  ;;  %1564 = vlog2.f32 %v2017_v4  ;;  %v2040_v13 = vand.u32 2147483647, %v256_v8  ;;  %v2042_v14 = vand.u32 2147483647, %v260_v10 }
  0x5c   : > { %1566 = vlog2.f32 %v2031_v9  ;;  %295 = vst [vmem:[#allocation2 + $0x18] sm:$0xff] %v2031_v9  ;;  %v2046_v15 = vand.u32 2147483647, %v262_v11  ;;  %298 = vst [vmem:[#allocation2 + $0x28] sm:$0xff] %v2038_v12  ;;  %v261_v17 = vld [vmem:[%s211_s21] sm:$0xff]  ;;  %v2144_v41 = vshrl.u32 %v313_v40, 7 }
  0x5d   : > { %1568 = vlog2.f32 %v2019_v5  ;;  %296 = vst [vmem:[#allocation2 + $0x10] sm:$0xff] %v2040_v13  ;;  %300 = vst [vmem:[#allocation2 + $0x20] sm:$0xff] %v2042_v14  ;;  %v2068_v18 = vand.u32 2147483647, %v259_v16  ;;  %v2070_v19 = vand.u32 2147483647, %v261_v17 }
  0x5e   : > { %593 = vrot.lane.b32.xlu1 %v2019_v5, %s1792_s5  ;;  %1570 = vlog2.f32 %v2040_v13  ;;  %302 = vst [vmem:[#allocation2 + $0x38] sm:$0xff] %v2046_v15  ;;  %v372_v42 = vrot.slane %v2015_v3, 1  ;;  %s1427_s15 = sshll.u32 %s1778_s18, 5  ;;  %v367_v43 = vrot.slane %v2031_v9, 1  ;;  %v487_v44 = vrot.slane %v2015_v3, 2  ;;  %s234_s24 = sand.u32 1, %s1746_s10  }
  0x5f   : > { %585 = vrot.lane.b32.xlu0 %v2031_v9, %s1792_s5  ;;  %1572 = vlog2.f32 %v2038_v12  ;;  %299 = vst [vmem:[#allocation2 + $0x8] sm:$0xff] %v2068_v18  ;;  %301 = vst [vmem:[#allocation2 + $0x40] sm:$0xff] %v2070_v19  ;;  %v482_v45 = vrot.slane %v2031_v9, 2  ;;  %v374_v47 = vrot.slane %v2038_v12, 1  ;;  %v370_v48 = vrot.slane %v2040_v13, 1  ;;  %s1426_s8 = sshll.u32 %s234_s24, 3 }
  0x60   : > { %1574 = vlog2.f32 %v2042_v14  ;;  %v489_v49 = vrot.slane %v2038_v12, 2  ;;  %v485_v50 = vrot.slane %v2040_v13, 2  ;;  %v378_v51 = vrot.slane %v2042_v14, 1  ;;  %s1429_s7 = sshll.u32 %s1778_s18, 7  ;;  %s236_s4 = scalar_lea.vmem [#allocation12], %s1426_s8 }
  0x61   : > { %1576 = vlog2.f32 %v2046_v15  ;;  %v315_v52 = vadd.s32 8, %v2144_v41  ;;  %v336_v54 = vld [vmem:[#allocation2] sm:$0xfe]  ;;  %v2157_v55 = vstv %s1427_s15  ;;  %v373_v56 = vsel %vm365_vm0, %v367_v43, %v372_v42  ;;  %s1308_s29 = sshll.u32 %s236_s4, 4  ;;  %s2867_s0 = scalar_lea.hbm %s2928_s2, %s1429_s7  ;;  %s1309_s29 = int_to_ptr.vmem [resolvable:$true] %s1308_s29 }
  0x62   : > { %597 = vrot.lane.b32.xlu1 %v2038_v12, %s1792_s5  ;;  %1578 = vlog2.f32 %v2068_v18  ;;  %v335_v46 = vld [vmem:[#allocation2 + $0x30] sm:$0xfe]  ;;  %vm480_vm1 = vcmask 1045504   ;;  %v469_v58 = vld [vmem:[#allocation2] sm:$0xfc]  ;;  %v2164_v59 = vadd.s32 %v2157_v55, %v2144_v41  ;;  %v375_v61 = vsel %vm365_vm0, %v370_v48, %v374_v47  ;;  %s1295_s21 = scalar_lea.sflag [#allocation9], %s234_s24 }
  0x63   : > { %595 = vrot.lane.b32.xlu0 %v2040_v13, %s1792_s5  ;;  %1580 = vlog2.f32 %v2070_v19  ;;  %v468_v53 = vld [vmem:[#allocation2 + $0x30] sm:$0xfc]  ;;  %v366_v57 = vrot.slane %v335_v46, 1  ;;  %v488_v60 = vsel %vm480_vm1, %v482_v45, %v487_v44  ;;  %v2170_v63 = vand.u32 127, %v313_v40  ;;  %p2957_p8 = scmp.ne.s32.totalorder %s2948_s25, 0 }
  0x64   : > { %v481_v0 = vrot.slane %v468_v53, 2  ;;  %v369_v1 = vrot.slane %v336_v54, 1  ;;  %v490_v2 = vsel %vm480_vm1, %v485_v50, %v489_v49  ;;  %v379_v6 = vsel %vm365_vm0, %v374_v47, %v378_v51 }
  0x65   : > { %v344_v62 = vld [vmem:[#allocation2 + $0x38] sm:$0x1]  ;;  %v2175_v7 = vadd.s32 %v2157_v55, %v315_v52  ;;  %v2178_v8 = vmul.f32 %v373_v56, %v2031_v9  ;;  %v484_v10 = vrot.slane %v469_v58, 2  ;;  %v493_v11 = vrot.slane %v2042_v14, 2 }
  0x66   : > { %599 = vrot.lane.b32.xlu1 %v2042_v14, %s1792_s5  ;;  %v368_v17 = vsel %vm365_vm0, %v366_v57, %v367_v43  ;;  %v2934_v52 = vrot.slane %v2068_v18, 1  ;;  %vm324_vm4 = vcmp.lt.s32.totalorder %v2164_v59, 63  ;;  %vm328_vm5 = vcmp.lt.s32.totalorder %v2164_v59, 62 }
  0x67   : > { %589 = vrot.lane.b32.xlu0 %v2068_v18, %s1792_s5  ;;  %v1563_v20 = vpop.eup %1562  ;;  %vm325_vm2 = vcmp.lt.s32.totalorder %v2175_v7, 63  ;;  %vm329_vm3 = vcmp.lt.s32.totalorder %v2175_v7, 62  ;;  %vm603_vm6 = vcmp.lt.s32.totalorder %v2170_v63, 127  ;;  %vm950_vm11 = vcmp.lt.s32.totalorder %v2170_v63, 126 }
  0x68   : > { %v1565_v21 = vpop.eup %1564  ;;  %v2078_v22 = vmul.f32 0.6931472, %v1563_v20  ;;  %v471_v20 = vld [vmem:[#allocation2 + $0x38] sm:$0x3] }
  0x69   : > { %v1567_v23 = vpop.eup %1566  ;;  %v2080_v24 = vmul.f32 0.6931472, %v1565_v21  ;;  %v509_v21 = vmul.f32 %v488_v60, %v2031_v9  ;;  %v497_v40 = vrot.slane %v471_v20, 2 }
  0x6a   : > { %v1569_v25 = vpop.eup %1568  ;;  %v2083_v26 = vmul.f32 0.6931472, %v1567_v23  ;;  %307 = vst [vmem:[#allocation3 + $0x38] sm:$0xff] %v2078_v22  ;;  %601 = vrot.lane.b32.xlu1 %v2046_v15, %s1792_s5  ;;  %v416_v16 = vrot.slane %v2078_v22, 1  ;;  %v2186_v23 = vmul.f32 %v375_v61, %v2040_v13 }
  0x6b   : > { %591 = vrot.lane.b32.xlu0 %v2070_v19, %s1792_s5  ;;  %v1571_v27 = vpop.eup %1570  ;;  %303 = vst [vmem:[#allocation3 + $0x48] sm:$0xff] %v2080_v24  ;;  %v2091_v28 = vmul.f32 0.6931472, %v1569_v25  ;;  %v2189_v25 = vmul.f32 %v490_v2, %v2040_v13 }
  0x6c   : > { %v1573_v29 = vpop.eup %1572  ;;  %305 = vst [vmem:[#allocation3 + $0x10] sm:$0xff] %v2083_v26  ;;  %v2095_v30 = vmul.f32 0.6931472, %v1571_v27  ;;  %v2192_v27 = vmul.f32 %v379_v6, %v2038_v12 }
  0x6d   : > { %v1575_v31 = vpop.eup %1574  ;;  %v2097_v32 = vmul.f32 0.6931472, %v1573_v29  ;;  %304 = vst [vmem:[#allocation3] sm:$0xff] %v2091_v28  ;;  %v520_v29 = vrot.slane %v2083_v26, 2 }
  0x6e   : > { %v1577_v33 = vpop.eup %1576  ;;  %306 = vst [vmem:[#allocation3 + $0x40] sm:$0xff] %v2095_v30  ;;  %636 = vrot.lane.b32.xlu1 %v2083_v26, %s1792_s5  ;;  %v2106_v34 = vmul.f32 0.6931472, %v1575_v31  ;;  %v2935_v31 = vrot.slane %v2078_v22, 2  ;;  %v414_v53 = vrot.slane %v2095_v30, 1 }
  0x6f   : > { %634 = vrot.lane.b32.xlu0 %v2080_v24, %s1792_s5  ;;  %308 = vst [vmem:[#allocation3 + $0x8] sm:$0xff] %v2097_v32  ;;  %v292_v35 = vmul.f32 0.6931472, %v1577_v33  ;;  %v1579_v36 = vpop.eup %1578  ;;  %v483_v33 = vsel %vm480_vm1, %v481_v0, %v482_v45  ;;  %v2933_v45 = vrot.slane %v2068_v18, 2  ;;  %v418_v54 = vrot.slane %v2097_v32, 1 }
  0x70   : > { %310 = vst [vmem:[#allocation3 + $0x18] sm:$0xff] %v2106_v34  ;;  %v1581_v37 = vpop.eup %1580  ;;  %v2117_v38 = vmul.f32 0.6931472, %v1579_v36  ;;  %v2199_v36 = vmul.f32 %v368_v17, %v2017_v4  ;;  %v526_v56 = vsel %vm480_vm1, %v520_v29, %v2935_v31  ;;  %v507_v57 = vmul.f32 %v483_v33, %v2017_v4  ;;  %v2231_v17 = vld [vmem:[#allocation2 + $0x40] sm:$0x1] }
  0x71   : > { %312 = vst [vmem:[#allocation3 + $0x20] sm:$0xff] %v292_v35  ;;  %v290_v39 = vmul.f32 0.6931472, %v1581_v37  ;;  %v486_v37 = vsel %vm480_vm1, %v484_v10, %v485_v50  ;;  %v523_v50 = vrot.slane %v2095_v30, 2  ;;  %v547_v20 = vadd.f32 %v526_v56, %v2083_v26 }
  0x72   : > { %644 = vrot.lane.b32.xlu1 %v2091_v28, %s1792_s5  ;;  %309 = vst [vmem:[#allocation3 + $0x30] sm:$0xff] %v2117_v38  ;;  %v345_v46 = vld [vmem:[#allocation3 + $0x48] sm:$0xfe]  ;;  %v2221_v58 = vmul.f32 %v486_v37, %v2019_v5  ;;  %v419_v33 = vsel %vm365_vm0, %v414_v53, %v418_v54  ;;  %v422_v37 = vrot.slane %v2106_v34, 1  ;;  %v420_v31 = vrot.slane %v2117_v38, 1 }
  0x73   : > { %638 = vrot.lane.b32.xlu0 %v2078_v22, %s1792_s5  ;;  %311 = vst [vmem:[#allocation3 + $0x28] sm:$0xff] %v290_v39  ;;  %v410_v60 = vrot.slane %v345_v46, 1  ;;  %v380_v46 = vrot.slane %v2231_v17, 1 }
  0x74   : > { %v346_v61 = vld [vmem:[#allocation3] sm:$0xfe]  ;;  %v423_v17 = vsel %vm365_vm0, %v418_v54, %v422_v37 }
  0x76   : > { %648 = vrot.lane.b32.xlu1 %v2097_v32, %s1792_s5 }
  0x77   : > { %646 = vrot.lane.b32.xlu0 %v2095_v30, %s1792_s5 }
  0x7a   : > { %650 = vrot.lane.b32.xlu1 %v2106_v34, %s1792_s5 }
  0x7b   : > { %640 = vrot.lane.b32.xlu0 %v2117_v38, %s1792_s5 }
  0x7e   : > { %652 = vrot.lane.b32.xlu1 %v292_v35, %s1792_s5 }
  0x7f   : > { %642 = vrot.lane.b32.xlu0 %v290_v39, %s1792_s5  ;;  %s1654_s5 = scalar_lea.vmem %s1309_s29, 128 }
  0x80   : > { %p1655_p7 = scmp.ne.s32.totalorder %s1309_s29, %s1654_s5 }
  0x82   : > { %932 = vrot.lane.b32.xlu1 %v2031_v9, %s1793_s23  ;;  %p1656_p0 = pnand %p1655_p7, %p2957_p8 }
  0x83   : > { %930 = vrot.lane.b32.xlu0 %v2017_v4, %s1793_s23 }
  0x84   : > { %p1657_p10 = pneg %p1656_p0 }
  0x86   : > { %940 = vrot.lane.b32.xlu1 %v2019_v5, %s1793_s23 }
  0x87   : > { %934 = vrot.lane.b32.xlu0 %v2015_v3, %s1793_s23 }
  0x8a   : > { %944 = vrot.lane.b32.xlu1 %v2038_v12, %s1793_s23 }
  0x8b   : > { %942 = vrot.lane.b32.xlu0 %v2040_v13, %s1793_s23 }
  0x8e   : > { %983 = vrot.lane.b32.xlu1 %v2083_v26, %s1793_s23 }
  0x8f   : > { %981 = vrot.lane.b32.xlu0 %v2080_v24, %s1793_s23 }
  0x92   : > { %991 = vrot.lane.b32.xlu1 %v2091_v28, %s1793_s23 }
  0x93   : > { %985 = vrot.lane.b32.xlu0 %v2078_v22, %s1793_s23 }
  0x96   : > { %995 = vrot.lane.b32.xlu1 %v2097_v32, %s1793_s23 }
  0x97   : > { %993 = vrot.lane.b32.xlu0 %v2095_v30, %s1793_s23 }
  0x9a   : > { %946 = vrot.lane.b32.xlu1 %v2042_v14, %s1793_s23 }
  0x9b   : > { %936 = vrot.lane.b32.xlu0 %v2068_v18, %s1793_s23 }
  0x9e   : > { %997 = vrot.lane.b32.xlu1 %v2106_v34, %s1793_s23 }
  0x9f   : > { %987 = vrot.lane.b32.xlu0 %v2117_v38, %s1793_s23 }
  0xa2   : > { %948 = vrot.lane.b32.xlu1 %v2046_v15, %s1793_s23  ;;  %v411_v15 = vrot.slane %v2083_v26, 1 }
  0xa3   : > { %938 = vrot.lane.b32.xlu0 %v2070_v19, %s1793_s23  ;;  %v382_v19 = vrot.slane %v344_v62, 1  ;;  %v473_v62 = vld [vmem:[#allocation3] sm:$0xfc] }
  0xa4   : > { %v417_v43 = vsel %vm365_vm0, %v411_v15, %v416_v16 }
  0xa5   : > { %v383_v47 = vsel %vm365_vm0, %v378_v51, %v382_v19  ;;  %v438_v6 = vadd.f32 %v417_v43, %v2083_v26  ;;  %v377_v19 = vsel %vm365_vm0, %v372_v42, %v2934_v52  ;;  %v522_v42 = vrot.slane %v473_v62, 2  ;;  %v354_v62 = vld [vmem:[#allocation3 + $0x20] sm:$0x1] }
  0xa6   : > { %999 = vrot.lane.b32.xlu1 %v292_v35, %s1793_s23  ;;  %v371_v35 = vsel %vm365_vm0, %v369_v1, %v370_v48  ;;  %v472_v48 = vld [vmem:[#allocation3 + $0x48] sm:$0xfc]  ;;  %v2224_v0 = vmul.f32 %v383_v47, %v2042_v14  ;;  %v498_v1 = vsel %vm480_vm1, %v493_v11, %v497_v40  ;;  %v531_v43 = vrot.slane %v2106_v34, 2 }
  0xa7   : > { %989 = vrot.lane.b32.xlu0 %v290_v39, %s1793_s23  ;;  %v494_v39 = vsel %vm480_vm1, %v489_v49, %v493_v11  ;;  %v527_v49 = vrot.slane %v2097_v32, 2  ;;  %v2218_v51 = vmul.f32 %v371_v35, %v2019_v5  ;;  %v519_v10 = vrot.slane %v472_v48, 2  ;;  %v470_v48 = vld [vmem:[#allocation2 + $0x40] sm:$0x3]  ;;  %s1794_s23 = smov [#allocation12]  }
  0xa8   : > { %v2228_v2 = vmul.f32 %v494_v39, %v2038_v12  ;;  %v492_v11 = vsel %vm480_vm1, %v487_v44, %v2933_v45  ;;  %v413_v39 = vrot.slane %v346_v61, 1  ;;  %v2250_v40 = vmul.f32 %v498_v1, %v2042_v14  ;;  %v475_v1 = vld [vmem:[#allocation3 + $0x20] sm:$0x3]  ;;  %s1658_s18 = sshll.u32 %s1794_s23, 4  ;;  %s1659_s18 = int_to_ptr.vmem [resolvable:$false] %s1658_s18 }
  0xa9   : > { %v528_v35 = vsel %vm480_vm1, %v523_v50, %v527_v49  ;;  %v412_v44 = vsel %vm365_vm0, %v410_v60, %v411_v15  ;;  %v396_v47 = vmul.f32 %v377_v19, %v2015_v3  ;;  %v511_v56 = vmul.f32 %v492_v11, %v2015_v3  ;;  %s1660_s15 = scalar_lea.vmem %s1659_s18, 256  ;;  %p1661_p9 = scmp.lt.s32.totalorder %s1309_s29, %s1659_s18 }
  0xaa   : > { %v521_v45 = vsel %vm480_vm1, %v519_v10, %v520_v29  ;;  %v439_v52 = vadd.f32 %v419_v33, %v2095_v30  ;;  %v548_v61 = vadd.f32 %v528_v35, %v2095_v30  ;;  %v446_v15 = vmul.f32 %v438_v6, %v2178_v8  ;;  %p1662_p6 = scmp.lt.s32.totalorder %s1660_s15, %s1654_s5 }
  0xab   : > { %v555_v60 = vmul.f32 %v547_v20, %v509_v21  ;;  %v436_v29 = vadd.f32 %v412_v44, %v2080_v24  ;;  %v415_v10 = vsel %vm365_vm0, %v413_v39, %v414_v53  ;;  %v524_v11 = vsel %vm480_vm1, %v522_v42, %v523_v50 }
  0xac   : > { %v532_v33 = vsel %vm480_vm1, %v527_v49, %v531_v43  ;;  %v545_v35 = vadd.f32 %v521_v45, %v2080_v24  ;;  %v426_v8 = vrot.slane %v354_v62, 1  ;;  %v535_v21 = vrot.slane %v475_v1, 2  ;;  %p1663_p12 = por %p1662_p6, %p1661_p9 }
  0xad   : > { %v495_v6 = vrot.slane %v470_v48, 2  ;;  %v447_v54 = vmul.f32 %v439_v52, %v2186_v23  ;;  %v556_v20 = vmul.f32 %v548_v61, %v2189_v25  ;;  %v441_v19 = vadd.f32 %v423_v17, %v2097_v32 }
  0xae   : > { %v421_v53 = vsel %vm365_vm0, %v416_v16, %v420_v31  ;;  %v437_v50 = vadd.f32 %v415_v10, %v2091_v28  ;;  %v546_v49 = vadd.f32 %v524_v11, %v2091_v28  ;;  %v550_v45 = vadd.f32 %v532_v33, %v2097_v32  ;;  %v353_v11 = vld [vmem:[#allocation3 + $0x28] sm:$0x1]  ;;  %p1664_p5 = pnand %p1663_p12, %p1657_p10 }
  0xaf   : > { %v2952_v39 = vrot.slane %v2117_v38, 2  ;;  %v2953_v23 = vrot.slane %v2078_v22, 2  ;;  %v454_v52 = vsel %vm325_vm2, %v446_v15, 0.0  ;;  %v2292_v42 = vsel %vm329_vm3, %v555_v60, 0.0 }
  0xb0   : > { %v444_v16 = vmul.f32 %v436_v29, %v2199_v36  ;;  %v316_v44 = vadd.s32 16, %v2144_v41  ;;  %v553_v48 = vmul.f32 %v545_v35, %v507_v57  ;;  %v427_v61 = vsel %vm365_vm0, %v422_v37, %v426_v8  ;;  %v474_v8 = vld [vmem:[#allocation3 + $0x28] sm:$0x3] }
  0xb1   : > { %v530_v25 = vsel %vm480_vm1, %v2953_v23, %v2952_v39  ;;  %v536_v62 = vsel %vm480_vm1, %v531_v43, %v535_v21  ;;  %v440_v1 = vadd.f32 %v421_v53, %v2078_v22  ;;  %v455_v17 = vsel %vm325_vm2, %v447_v54, 0.0 }
  0xb2   : > { %v2303_v15 = vsel %vm329_vm3, %v556_v20, 0.0  ;;  %v449_v60 = vmul.f32 %v441_v19, %v2192_v27  ;;  %v549_v36 = vadd.f32 %v530_v25, %v2078_v22  ;;  %v445_v57 = vmul.f32 %v437_v50, %v2218_v51 }
  0xb3   : > { %v554_v37 = vmul.f32 %v546_v49, %v2221_v58  ;;  %v2310_v43 = vmul.f32 %v550_v45, %v2228_v2  ;;  %v2954_v33 = vrot.slane %v2068_v18, 1  ;;  %v452_v27 = vsel %vm324_vm4, %v444_v16, 0.0 }
  0xb4   : > { %v443_v19 = vadd.f32 %v427_v61, %v2106_v34  ;;  %v552_v21 = vadd.f32 %v536_v62, %v2106_v34  ;;  %v2320_v51 = vadd.s32 %v2157_v55, %v316_v44  ;;  %v561_v58 = vsel %vm328_vm5, %v553_v48, 0.0 }
  0xb5   : > { %v381_v35 = vsel %vm365_vm0, %v2954_v33, %v380_v46  ;;  %v448_v2 = vmul.f32 %v440_v1, %v396_v47  ;;  %v2955_v54 = vrot.slane %v2068_v18, 2  ;;  %v317_v46 = vadd.s32 24, %v2144_v41 }
  0xb6   : > { %v398_v53 = vmul.f32 %v381_v35, %v2068_v18  ;;  %v424_v50 = vrot.slane %v353_v11, 1  ;;  %v533_v49 = vrot.slane %v474_v8, 2  ;;  %v557_v45 = vmul.f32 %v549_v36, %v511_v56 }
  0xb7   : > { %v496_v20 = vsel %vm480_vm1, %v2955_v54, %v495_v6  ;;  %v453_v25 = vsel %vm324_vm4, %v445_v57, 0.0  ;;  %v562_v16 = vsel %vm328_vm5, %v554_v37, 0.0  ;;  %v451_v41 = vmul.f32 %v443_v19, %v2224_v0 }
  0xb8   : > { %v560_v44 = vmul.f32 %v552_v21, %v2250_v40  ;;  %v513_v56 = vmul.f32 %v496_v20, %v2068_v18  ;;  %vm326_vm7 = vcmp.lt.s32.totalorder %v2320_v51, 63  ;;  %v2342_v48 = vadd.s32 %v2157_v55, %v317_v46 }
  0xb9   : > { %vm330_vm8 = vcmp.lt.s32.totalorder %v2320_v51, 62  ;;  %v456_v61 = vsel %vm326_vm7, %v448_v2, 0.0  ;;  %v460_v62 = vadd.f32 %v454_v52, %v452_v27  ;;  %v425_v0 = vsel %vm365_vm0, %v420_v31, %v424_v50 }
  0xba   : > { %v2956_v40 = vrot.slane %v2117_v38, 2  ;;  %v461_v57 = vadd.f32 %v455_v17, %v453_v25  ;;  %v565_v55 = vsel %vm330_vm8, %v557_v45, 0.0  ;;  %v442_v2 = vadd.f32 %v425_v0, %v2117_v38 }
  0xbb   : > { %vm327_vm9 = vcmp.lt.s32.totalorder %v2342_v48, 63  ;;  %v457_v50 = vsel %vm326_vm7, %v449_v60, 0.0  ;;  %vm331_vm10 = vcmp.lt.s32.totalorder %v2342_v48, 62  ;;  %v569_v0 = vadd.f32 %v2292_v42, %v561_v58 }
  0xbc   : > { %v534_v1 = vsel %vm480_vm1, %v2956_v40, %v533_v49  ;;  %v570_v60 = vadd.f32 %v2303_v15, %v562_v16  ;;  %v463_v58 = vadd.f32 %v461_v57, %v457_v50 }
  0xbd   : > { %v551_v54 = vadd.f32 %v534_v1, %v2117_v38 }
  0xcc   : > { %v588_v29 = vpop.permute.xlu1 %587 }
  0xcd   : > { %v584_v10 = vpop.permute.xlu0 %583 }
  0xd0   : > { %v594_v39 = vpop.permute.xlu1 %593 }
  0xd1   : > { %v586_v23 = vpop.permute.xlu0 %585  ;;  %v604_v47 = vsel %vm603_vm6, %v584_v10, %v594_v39  ;;  %v609_v6 = vsel %vm603_vm6, %v594_v39, %v584_v10 }
  0xd2   : > { %614 = vst [vmem:[#allocation4 + $0x8] sm:$0xff] %v604_v47  ;;  %615 = vst [vmem:[#allocation4 + $0x48] sm:$0xff] %v609_v6  ;;  %v462_v6 = vadd.f32 %v460_v62, %v456_v61 }
  0xd4   : > { %v598_v36 = vpop.permute.xlu1 %597 }
  0xd5   : > { %v596_v10 = vpop.permute.xlu0 %595  ;;  %v2357_v37 = vsel %vm603_vm6, %v588_v29, %v598_v36  ;;  %v2361_v52 = vsel %vm603_vm6, %v598_v36, %v588_v29 }
  0xd6   : > { %v2365_v31 = vsel %vm603_vm6, %v586_v23, %v596_v10  ;;  %v2369_v11 = vsel %vm603_vm6, %v596_v10, %v586_v23  ;;  %v710_v17 = vrot.slane %v2357_v37, 1  ;;  %v712_v33 = vrot.slane %v2361_v52, 1 }
  0xd7   : > { %v824_v35 = vrot.slane %v2357_v37, 2  ;;  %v826_v8 = vrot.slane %v2361_v52, 2  ;;  %v705_v27 = vrot.slane %v2365_v31, 1  ;;  %v708_v29 = vrot.slane %v2369_v11, 1 }
  0xd8   : > { %v819_v19 = vrot.slane %v2365_v31, 2  ;;  %v822_v21 = vrot.slane %v2369_v11, 2  ;;  %v600_v20 = vpop.permute.xlu1 %599  ;;  %v459_v10 = vsel %vm327_vm9, %v451_v41, 0.0  ;;  %v566_v37 = vsel %vm330_vm8, %v2310_v43, 0.0 }
  0xd9   : > { %v590_v46 = vpop.permute.xlu0 %589  ;;  %v674_v39 = vld [vmem:[#allocation4 + $0x8] sm:$0xfe]  ;;  %v711_v23 = vsel %vm365_vm0, %v705_v27, %v710_v17  ;;  %v713_v25 = vsel %vm365_vm0, %v708_v29, %v712_v33  ;;  %v450_v52 = vmul.f32 %v442_v2, %v398_v53  ;;  %v559_v31 = vmul.f32 %v551_v54, %v513_v56 }
  0xda   : > { %v2386_v49 = vsel %vm603_vm6, %v590_v46, %v600_v20  ;;  %v2390_v45 = vsel %vm603_vm6, %v600_v20, %v590_v46  ;;  %v675_v47 = vld [vmem:[#allocation4 + $0x48] sm:$0xfe]  ;;  %v825_v1 = vsel %vm480_vm1, %v819_v19, %v824_v35  ;;  %v827_v36 = vsel %vm480_vm1, %v822_v21, %v826_v8 }
  0xdb   : > { %v806_v40 = vld [vmem:[#allocation4 + $0x8] sm:$0xfc]  ;;  %v704_v62 = vrot.slane %v674_v39, 1  ;;  %v707_v20 = vrot.slane %v675_v47, 1  ;;  %v568_v41 = vsel %vm331_vm10, %v560_v44, 0.0  ;;  %v714_v53 = vrot.slane %v2386_v49, 1 }
  0xdc   : > { %v602_v11 = vpop.permute.xlu1 %601  ;;  %v807_v42 = vld [vmem:[#allocation4 + $0x48] sm:$0xfc]  ;;  %v818_v43 = vrot.slane %v806_v40, 2  ;;  %v571_v56 = vadd.f32 %v569_v0, %v565_v55  ;;  %v572_v2 = vadd.f32 %v570_v60, %v566_v37  ;;  %v716_v57 = vrot.slane %v2390_v45, 1 }
  0xdd   : > { %v592_v61 = vpop.permute.xlu0 %591  ;;  %v821_v54 = vrot.slane %v807_v42, 2  ;;  %v828_v46 = vrot.slane %v2386_v49, 2  ;;  %v830_v50 = vrot.slane %v2390_v45, 2  ;;  %v706_v47 = vsel %vm365_vm0, %v704_v62, %v705_v27 }
  0xde   : > { %v608_v15 = vsel %vm603_vm6, %v592_v61, %v602_v11  ;;  %v613_v16 = vsel %vm603_vm6, %v602_v11, %v592_v61  ;;  %v715_v44 = vsel %vm365_vm0, %v710_v17, %v714_v53  ;;  %v458_v40 = vsel %vm327_vm9, %v450_v52, 0.0 }
  0xdf   : > { %622 = vst [vmem:[#allocation4 + $0x30] sm:$0xff] %v608_v15  ;;  %623 = vst [vmem:[#allocation4 + $0x18] sm:$0xff] %v613_v16  ;;  %v567_v55 = vsel %vm331_vm10, %v559_v31, 0.0  ;;  %v709_v0 = vsel %vm365_vm0, %v707_v20, %v708_v29  ;;  %v717_v60 = vsel %vm365_vm0, %v712_v33, %v716_v57  ;;  %v829_v49 = vsel %vm480_vm1, %v824_v35, %v828_v46 }
  0xe0   : > { %v637_v39 = vpop.permute.xlu1 %636  ;;  %v831_v37 = vsel %vm480_vm1, %v826_v8, %v830_v50  ;;  %v820_v27 = vsel %vm480_vm1, %v818_v43, %v819_v19  ;;  %v2427_v61 = vadd.f32 %v463_v58, %v459_v10  ;;  %v2429_v17 = vadd.f32 %v572_v2, %v568_v41 }
  0xe1   : > { %v635_v11 = vpop.permute.xlu0 %634  ;;  %v2432_v52 = vmul.f32 %v711_v23, %v2031_v9  ;;  %v823_v31 = vsel %vm480_vm1, %v821_v54, %v822_v21  ;;  %v2435_v29 = vadd.f32 %v462_v6, %v458_v40  ;;  %v2437_v33 = vadd.f32 %v571_v56, %v567_v55 }
  0xe2   : > { %v2440_v42 = vmul.f32 %v706_v47, %v2017_v4  ;;  %v2443_v8 = vmul.f32 %v709_v0, %v2019_v5  ;;  %v2446_v19 = vmul.f32 %v713_v25, %v2040_v13  ;;  %v2449_v23 = vmul.f32 %v825_v1, %v2031_v9 }
  0xe3   : > { %v2456_v10 = vmul.f32 %v820_v27, %v2017_v4  ;;  %v2459_v58 = vmul.f32 %v827_v36, %v2040_v13  ;;  %v2462_v9 = vmul.f32 %v823_v31, %v2019_v5  ;;  %v2465_v56 = vmul.f32 %v715_v44, %v2015_v3 }
  0xe4   : > { %v645_v35 = vpop.permute.xlu1 %644  ;;  %v2468_v4 = vmul.f32 %v717_v60, %v2038_v12  ;;  %v2471_v13 = vmul.f32 %v829_v49, %v2015_v3  ;;  %v2474_v36 = vmul.f32 %v831_v37, %v2038_v12 }
  0xe5   : > { %v639_v62 = vpop.permute.xlu0 %638  ;;  %v654_v21 = vsel %vm603_vm6, %v635_v11, %v645_v35  ;;  %v659_v6 = vsel %vm603_vm6, %v645_v35, %v635_v11 }
  0xe6   : > { %v682_v15 = vld [vmem:[#allocation4 + $0x30] sm:$0x1]  ;;  %v683_v16 = vld [vmem:[#allocation4 + $0x18] sm:$0x1]  ;;  %664 = vst [vmem:[#allocation5 + $0x8] sm:$0xff] %v654_v21  ;;  %665 = vst [vmem:[#allocation5] sm:$0xff] %v659_v6 }
  0xe7   : > { %v808_v20 = vld [vmem:[#allocation4 + $0x30] sm:$0x3]  ;;  %v718_v25 = vrot.slane %v682_v15, 1  ;;  %v720_v1 = vrot.slane %v683_v16, 1  ;;  %v809_v41 = vld [vmem:[#allocation4 + $0x18] sm:$0x3] }
  0xe8   : > { %v832_v43 = vrot.slane %v808_v20, 2  ;;  %v649_v2 = vpop.permute.xlu1 %648  ;;  %v834_v5 = vrot.slane %v809_v41, 2 }
  0xe9   : > { %v647_v54 = vpop.permute.xlu0 %646  ;;  %v719_v11 = vsel %vm365_vm0, %v714_v53, %v718_v25  ;;  %v721_v47 = vsel %vm365_vm0, %v716_v57, %v720_v1  ;;  %v2481_v44 = vsel %vm603_vm6, %v639_v62, %v649_v2  ;;  %v2485_v3 = vsel %vm603_vm6, %v649_v2, %v639_v62 }
  0xea   : > { %v833_v40 = vsel %vm480_vm1, %v828_v46, %v832_v43  ;;  %v655_v12 = vsel %vm603_vm6, %v637_v39, %v647_v54  ;;  %v660_v55 = vsel %vm603_vm6, %v647_v54, %v637_v39  ;;  %v754_v53 = vrot.slane %v2481_v44, 1 }
  0xeb   : > { %v756_v57 = vrot.slane %v2485_v3, 1  ;;  %v862_v46 = vrot.slane %v2481_v44, 2  ;;  %v864_v0 = vrot.slane %v2485_v3, 2  ;;  %v749_v60 = vrot.slane %v655_v12, 1 }
  0xec   : > { %v752_v49 = vrot.slane %v660_v55, 1  ;;  %v857_v37 = vrot.slane %v655_v12, 2  ;;  %v860_v27 = vrot.slane %v660_v55, 2  ;;  %v651_v31 = vpop.permute.xlu1 %650  ;;  %v2496_v35 = vmul.f32 %v719_v11, %v2068_v18 }
  0xed   : > { %v2499_v62 = vmul.f32 %v721_v47, %v2042_v14  ;;  %v835_v39 = vsel %vm480_vm1, %v830_v50, %v834_v5  ;;  %v2505_v21 = vmul.f32 %v833_v40, %v2068_v18  ;;  %v641_v6 = vpop.permute.xlu0 %640  ;;  %v684_v15 = vld [vmem:[#allocation5 + $0x8] sm:$0xfe]  ;;  %v685_v16 = vld [vmem:[#allocation5] sm:$0xfe]  ;;  %v755_v25 = vsel %vm365_vm0, %v749_v60, %v754_v53 }
  0xee   : > { %v810_v20 = vld [vmem:[#allocation5 + $0x8] sm:$0xfc]  ;;  %v757_v1 = vsel %vm365_vm0, %v752_v49, %v756_v57  ;;  %v863_v41 = vsel %vm480_vm1, %v857_v37, %v862_v46  ;;  %v865_v43 = vsel %vm480_vm1, %v860_v27, %v864_v0  ;;  %v2513_v45 = vsel %vm603_vm6, %v641_v6, %v651_v31  ;;  %v811_v54 = vld [vmem:[#allocation5] sm:$0xfc] }
  0xef   : > { %v2517_v18 = vsel %vm603_vm6, %v651_v31, %v641_v6  ;;  %v748_v50 = vrot.slane %v684_v15, 1  ;;  %v751_v2 = vrot.slane %v685_v16, 1  ;;  %v856_v5 = vrot.slane %v810_v20, 2 }
  0xf0   : > { %v859_v11 = vrot.slane %v811_v54, 2  ;;  %v776_v47 = vadd.f32 %v755_v25, %v2083_v26  ;;  %v777_v40 = vadd.f32 %v757_v1, %v2095_v30  ;;  %v653_v44 = vpop.permute.xlu1 %652  ;;  %v884_v55 = vadd.f32 %v863_v41, %v2083_v26 }
  0xf1   : > { %v750_v3 = vsel %vm365_vm0, %v748_v50, %v749_v60  ;;  %v753_v12 = vsel %vm365_vm0, %v751_v2, %v752_v49  ;;  %v885_v31 = vadd.f32 %v865_v43, %v2095_v30  ;;  %v643_v6 = vpop.permute.xlu0 %642  ;;  %v858_v20 = vsel %vm480_vm1, %v856_v5, %v857_v37 }
  0xf2   : > { %v774_v15 = vadd.f32 %v750_v3, %v2080_v24  ;;  %v775_v16 = vadd.f32 %v753_v12, %v2091_v28  ;;  %v861_v25 = vsel %vm480_vm1, %v859_v11, %v860_v27  ;;  %v658_v1 = vsel %vm603_vm6, %v643_v6, %v653_v44 }
  0xf3   : > { %v663_v60 = vsel %vm603_vm6, %v653_v44, %v643_v6  ;;  %v882_v49 = vadd.f32 %v858_v20, %v2080_v24  ;;  %v883_v26 = vadd.f32 %v861_v25, %v2091_v28  ;;  %672 = vst [vmem:[#allocation5 + $0x38] sm:$0xff] %v658_v1  ;;  %v758_v30 = vrot.slane %v2513_v45, 1 }
  0xf4   : > { %673 = vst [vmem:[#allocation5 + $0x18] sm:$0xff] %v663_v60  ;;  %v760_v41 = vrot.slane %v2517_v18, 1  ;;  %v866_v37 = vrot.slane %v2513_v45, 2  ;;  %v868_v27 = vrot.slane %v2517_v18, 2  ;;  %v933_v43 = vpop.permute.xlu1 %932  ;;  %v782_v50 = vmul.f32 %v774_v15, %v2440_v42 }
  0xf5   : > { %v783_v2 = vmul.f32 %v775_v16, %v2443_v8  ;;  %v784_v54 = vmul.f32 %v776_v47, %v2432_v52  ;;  %v785_v24 = vmul.f32 %v777_v40, %v2446_v19  ;;  %v931_v28 = vpop.permute.xlu0 %930  ;;  %v759_v5 = vsel %vm365_vm0, %v754_v53, %v758_v30 }
  0xf6   : > { %v761_v11 = vsel %vm365_vm0, %v756_v57, %v760_v41  ;;  %v867_v44 = vsel %vm480_vm1, %v862_v46, %v866_v37  ;;  %v869_v45 = vsel %vm480_vm1, %v864_v0, %v868_v27  ;;  %v778_v18 = vadd.f32 %v759_v5, %v2078_v22 }
  0xf7   : > { %v779_v3 = vadd.f32 %v761_v11, %v2097_v32  ;;  %v790_v42 = vsel %vm324_vm4, %v782_v50, 0.0  ;;  %v791_v52 = vsel %vm324_vm4, %v783_v2, 0.0  ;;  %v792_v8 = vsel %vm325_vm2, %v784_v54, 0.0 }
  0xf8   : > { %v793_v19 = vsel %vm325_vm2, %v785_v24, 0.0  ;;  %v851_v53 = vmul.f32 %v835_v39, %v2042_v14  ;;  %v886_v57 = vadd.f32 %v867_v44, %v2078_v22  ;;  %v941_v46 = vpop.permute.xlu1 %940  ;;  %v786_v0 = vmul.f32 %v778_v18, %v2465_v56 }
  0xf9   : > { %v787_v47 = vmul.f32 %v779_v3, %v2468_v4  ;;  %v798_v40 = vadd.f32 %v792_v8, %v790_v42  ;;  %v799_v12 = vadd.f32 %v793_v19, %v791_v52  ;;  %v951_v6 = vsel %vm950_vm11, %v931_v28, %v941_v46  ;;  %v935_v16 = vpop.permute.xlu0 %934 }
  0xfa   : > { %v956_v15 = vsel %vm950_vm11, %v941_v46, %v931_v28  ;;  %v887_v20 = vadd.f32 %v869_v45, %v2097_v32  ;;  %v890_v14 = vmul.f32 %v882_v49, %v2456_v10  ;;  %961 = vst [vmem:[#allocation4 + $0x8] sm:$0xff] %v951_v6  ;;  %v692_v22 = vld [vmem:[#allocation5 + $0x38] sm:$0x1]  ;;  %v891_v4 = vmul.f32 %v883_v26, %v2462_v9 }
  0xfb   : > { %962 = vst [vmem:[#allocation4 + $0x48] sm:$0xff] %v956_v15  ;;  %v693_v39 = vld [vmem:[#allocation5 + $0x18] sm:$0x1]  ;;  %v892_v25 = vmul.f32 %v884_v55, %v2449_v23  ;;  %v893_v1 = vmul.f32 %v885_v31, %v2459_v58  ;;  %v894_v60 = vmul.f32 %v886_v57, %v2471_v13  ;;  %v762_v50 = vrot.slane %v692_v22, 1 }
  0xfc   : > { %v812_v56 = vld [vmem:[#allocation5 + $0x38] sm:$0x3]  ;;  %v764_v2 = vrot.slane %v693_v39, 1  ;;  %v794_v32 = vsel %vm326_vm7, %v786_v0, 0.0  ;;  %v945_v10 = vpop.permute.xlu1 %944  ;;  %v795_v28 = vsel %vm326_vm7, %v787_v47, 0.0  ;;  %v895_v9 = vmul.f32 %v887_v20, %v2474_v36 }
  0xfd   : > { %v813_v54 = vld [vmem:[#allocation5 + $0x18] sm:$0x3]  ;;  %v870_v24 = vrot.slane %v812_v56, 2  ;;  %v800_v5 = vadd.f32 %v798_v40, %v794_v32  ;;  %v2579_v23 = vsel %vm950_vm11, %v935_v16, %v945_v10  ;;  %v2583_v58 = vsel %vm950_vm11, %v945_v10, %v935_v16  ;;  %v943_v13 = vpop.permute.xlu0 %942 }
  0xfe   : > { %v872_v49 = vrot.slane %v813_v54, 2  ;;  %v763_v55 = vsel %vm365_vm0, %v758_v30, %v762_v50  ;;  %v765_v31 = vsel %vm365_vm0, %v760_v41, %v764_v2  ;;  %v2589_v26 = vsel %vm950_vm11, %v933_v43, %v943_v13 }
  0xff   : > { %v2593_v36 = vsel %vm950_vm11, %v943_v13, %v933_v43  ;;  %v780_v11 = vadd.f32 %v763_v55, %v2117_v38  ;;  %v781_v44 = vadd.f32 %v765_v31, %v2106_v34  ;;  %v801_v45 = vadd.f32 %v799_v12, %v795_v28 }
 0x100   : > { %v871_v18 = vsel %vm480_vm1, %v866_v37, %v870_v24  ;;  %v873_v3 = vsel %vm480_vm1, %v868_v27, %v872_v49  ;;  %v898_v30 = vsel %vm328_vm5, %v890_v14, 0.0  ;;  %v984_v41 = vpop.permute.xlu1 %983  ;;  %v899_v57 = vsel %vm328_vm5, %v891_v4, 0.0 }
 0x101   : > { %v788_v42 = vmul.f32 %v780_v11, %v2496_v35  ;;  %v789_v52 = vmul.f32 %v781_v44, %v2499_v62  ;;  %v888_v43 = vadd.f32 %v871_v18, %v2117_v38  ;;  %v889_v8 = vadd.f32 %v873_v3, %v2106_v34  ;;  %v982_v19 = vpop.permute.xlu0 %981  ;;  %v1021_v22 = vld [vmem:[#allocation4 + $0x8] sm:$0xfe] }
 0x102   : > { %v900_v37 = vsel %vm329_vm3, %v892_v25, 0.0  ;;  %v901_v27 = vsel %vm329_vm3, %v893_v1, 0.0  ;;  %v902_v46 = vsel %vm330_vm8, %v894_v60, 0.0  ;;  %v903_v40 = vsel %vm330_vm8, %v895_v9, 0.0  ;;  %v1022_v4 = vld [vmem:[#allocation4 + $0x48] sm:$0xfe] }
 0x103   : > { %v796_v35 = vsel %vm327_vm9, %v788_v42, 0.0  ;;  %v797_v38 = vsel %vm327_vm9, %v789_v52, 0.0  ;;  %v896_v34 = vmul.f32 %v888_v43, %v2505_v21  ;;  %v897_v62 = vmul.f32 %v889_v8, %v851_v53  ;;  %v2655_v55 = vld [vmem:[#allocation4 + $0x8] sm:$0xfc] }
 0x104   : > { %v802_v0 = vadd.f32 %v800_v5, %v796_v35  ;;  %v803_v47 = vadd.f32 %v801_v45, %v797_v38  ;;  %v906_v12 = vadd.f32 %v900_v37, %v898_v30  ;;  %v992_v6 = vpop.permute.xlu1 %991  ;;  %v2621_v15 = vadd.s32 128, %v2170_v63 }
 0x105   : > { %v904_v16 = vsel %vm331_vm10, %v896_v34, 0.0  ;;  %v905_v20 = vsel %vm331_vm10, %v897_v62, 0.0  ;;  %v907_v14 = vadd.f32 %v901_v27, %v899_v57  ;;  %v1001_v21 = vsel %vm950_vm11, %v982_v19, %v992_v6  ;;  %v986_v39 = vpop.permute.xlu0 %985 }
 0x106   : > { %v1006_v53 = vsel %vm950_vm11, %v992_v6, %v982_v19  ;;  %v908_v56 = vadd.f32 %v906_v12, %v902_v46  ;;  %1011 = vst [vmem:[#allocation5 + $0x8] sm:$0xff] %v1001_v21  ;;  %v575_v1 = vadd.f32 %v2437_v33, %v2435_v29  ;;  %v576_v60 = vadd.f32 %v2429_v17, %v2427_v61 }
 0x107   : > { %1012 = vst [vmem:[#allocation5] sm:$0xff] %v1006_v53  ;;  %v909_v25 = vadd.f32 %v907_v14, %v903_v40  ;;  %v1051_v2 = vrot.slane %v1021_v22, 1  ;;  %vm915_vm12 = vcmp.lt.s32.totalorder %v2621_v15, 255  ;;  %v1052_v32 = vrot.slane %v2589_v26, 1  ;;  %v2687_v14 = vld [vmem:[#allocation3 + $0x10] sm:$0xff] }
 0x108   : > { %v910_v50 = vadd.f32 %v908_v56, %v904_v16  ;;  %v996_v54 = vpop.permute.xlu1 %995  ;;  %v1054_v10 = vrot.slane %v1022_v4, 1  ;;  %v1057_v61 = vrot.slane %v2579_v23, 1  ;;  %v1055_v13 = vrot.slane %v2593_v36, 1  ;;  %v2696_v4 = vld [vmem:[#allocation3] sm:$0xff] }
 0x109   : > { %v911_v24 = vadd.f32 %v909_v25, %v905_v20  ;;  %v2639_v49 = vsel %vm950_vm11, %v986_v39, %v996_v54  ;;  %v2643_v28 = vsel %vm950_vm11, %v996_v54, %v986_v39  ;;  %v994_v29 = vpop.permute.xlu0 %993  ;;  %v1053_v11 = vsel %vm365_vm0, %v1051_v2, %v1052_v32  ;;  %v2693_v39 = vld [vmem:[#allocation3 + $0x48] sm:$0xff]  ;;  %v2710_v54 = vld [vmem:[#allocation2 + $0x30] sm:$0xff] }
 0x10a   : > { %v912_v33 = vadd.f32 %v910_v50, %v802_v0  ;;  %v2648_v17 = vsel %vm950_vm11, %v984_v41, %v994_v29  ;;  %v2652_v5 = vsel %vm950_vm11, %v994_v29, %v984_v41  ;;  %v1059_v44 = vrot.slane %v2583_v58, 1  ;;  %v2716_v29 = vld [vmem:[#allocation2 + $0x18] sm:$0xff] }
 0x10b   : > { %v913_v9 = vadd.f32 %v911_v24, %v803_v47  ;;  %v1096_v45 = vrot.slane %v2648_v17, 1  ;;  %v1099_v30 = vrot.slane %v2652_v5, 1  ;;  %v1101_v41 = vrot.slane %v2639_v49, 1 }
 0x10c   : > { %v2657_v31 = vadd.f32 %v912_v33, %v575_v1  ;;  %v947_v18 = vpop.permute.xlu1 %946  ;;  %v1103_v42 = vrot.slane %v2643_v28, 1  ;;  %v1056_v57 = vsel %vm365_vm0, %v1054_v10, %v1055_v13  ;;  %v1058_v37 = vsel %vm365_vm0, %v1052_v32, %v1057_v61  ;;  %v2699_v1 = vld [vmem:[#allocation3 + $0x40] sm:$0xff]  ;;  %v2713_v32 = vld [vmem:[#allocation2] sm:$0xff] }
 0x10d   : > { %v917_v3 = vsel %vm915_vm12, %v913_v9, 0.0  ;;  %v937_v52 = vpop.permute.xlu0 %936  ;;  %v1031_v8 = vld [vmem:[#allocation5 + $0x8] sm:$0xfe]  ;;  %v1165_v27 = vrot.slane %v2655_v55, 2  ;;  %v1060_v62 = vsel %vm365_vm0, %v1055_v13, %v1059_v44  ;;  %v1102_v47 = vsel %vm365_vm0, %v1096_v45, %v1101_v41 }
 0x10e   : > { %v2667_v43 = vadd.f32 %v917_v3, %v576_v60  ;;  %v1032_v19 = vld [vmem:[#allocation5] sm:$0xfe]  ;;  %v2674_v46 = vsel %vm950_vm11, %v937_v52, %v947_v18  ;;  %v2678_v35 = vsel %vm950_vm11, %v947_v18, %v937_v52  ;;  %v1095_v38 = vrot.slane %v1031_v8, 1  ;;  %v2727_v3 = vld [vmem:[#allocation2 + $0x48] sm:$0xff] }
 0x10f   : > { %v1098_v34 = vrot.slane %v1032_v19, 1  ;;  %v1061_v0 = vrot.slane %v2674_v46, 1  ;;  %v1104_v40 = vsel %vm365_vm0, %v1099_v30, %v1103_v42  ;;  %v1063_v6 = vrot.slane %v2678_v35, 1  ;;  %v1154_v19 = vld [vmem:[#allocation4 + $0x48] sm:$0xfc] }
 0x110   : > { %v998_v12 = vpop.permute.xlu1 %997  ;;  %v1097_v16 = vsel %vm365_vm0, %v1095_v38, %v1096_v45  ;;  %v1123_v22 = vadd.f32 %v2687_v14, %v1102_v47  ;;  %v1124_v60 = vadd.f32 %v2699_v1, %v1104_v40  ;;  %v1077_v24 = vmul.f32 %v2710_v54, %v1053_v11  ;;  %v2740_v40 = vld [vmem:[#allocation3 + $0x38] sm:$0xff] }
 0x111   : > { %v1100_v20 = vsel %vm365_vm0, %v1098_v34, %v1099_v30  ;;  %v988_v21 = vpop.permute.xlu0 %987  ;;  %v1062_v53 = vsel %vm365_vm0, %v1057_v61, %v1061_v0  ;;  %v1121_v56 = vadd.f32 %v2693_v39, %v1097_v16  ;;  %v1078_v10 = vmul.f32 %v2713_v32, %v1056_v57  ;;  %v2719_v61 = vld [vmem:[#allocation2 + $0x10] sm:$0xff]  ;;  %v2743_v16 = vld [vmem:[#allocation3 + $0x8] sm:$0xff] }
 0x112   : > { %v1122_v25 = vadd.f32 %v2696_v4, %v1100_v20  ;;  %v2704_v50 = vsel %vm950_vm11, %v988_v21, %v998_v12  ;;  %v2708_v2 = vsel %vm950_vm11, %v998_v12, %v988_v21  ;;  %v1079_v33 = vmul.f32 %v2716_v29, %v1058_v37  ;;  %v1593_v20 = vld [vmem:[#allocation2 + $0x28] sm:$0xff] }
 0x113   : > { %v1080_v9 = vmul.f32 %v2719_v61, %v1060_v62  ;;  %v1105_v13 = vrot.slane %v2704_v50, 1  ;;  %v1107_v45 = vrot.slane %v2708_v2, 1  ;;  %v1064_v11 = vsel %vm365_vm0, %v1059_v44, %v1063_v6 }
 0x114   : > { %v949_v18 = vpop.permute.xlu1 %948  ;;  %v1081_v30 = vmul.f32 %v2727_v3, %v1062_v53  ;;  %v1129_v52 = vmul.f32 %v1121_v56, %v1077_v24  ;;  %v1130_v8 = vmul.f32 %v1122_v25, %v1078_v10  ;;  %v1131_v34 = vmul.f32 %v1123_v22, %v1079_v33 }
 0x115   : > { %v939_v57 = vpop.permute.xlu0 %938  ;;  %v1106_v37 = vsel %vm365_vm0, %v1101_v41, %v1105_v13  ;;  %v1108_v38 = vsel %vm365_vm0, %v1103_v42, %v1107_v45  ;;  %v1132_v62 = vmul.f32 %v1124_v60, %v1080_v9  ;;  %v1082_v42 = vmul.f32 %v1593_v20, %v1064_v11 }
 0x116   : > { %v955_v44 = vsel %vm950_vm11, %v939_v57, %v949_v18  ;;  %v960_v47 = vsel %vm950_vm11, %v949_v18, %v939_v57  ;;  %v1125_v12 = vadd.f32 %v2740_v40, %v1106_v37  ;;  %v1126_v41 = vadd.f32 %v2743_v16, %v1108_v38 }
 0x117   : > { %969 = vst [vmem:[#allocation4 + $0x30] sm:$0xff] %v955_v44  ;;  %970 = vst [vmem:[#allocation4 + $0x18] sm:$0xff] %v960_v47  ;;  %v1166_v22 = vrot.slane %v2589_v26, 2  ;;  %v1168_v21 = vrot.slane %v1154_v19, 2  ;;  %v1169_v53 = vrot.slane %v2593_v36, 2  ;;  %v1137_v60 = vsel %vm324_vm4, %v1129_v52, 0.0 }
 0x118   : > { %v1000_v56 = vpop.permute.xlu1 %999  ;;  %v1133_v25 = vmul.f32 %v1125_v12, %v1081_v30  ;;  %v1138_v24 = vsel %vm324_vm4, %v1130_v8, 0.0  ;;  %v1134_v33 = vmul.f32 %v1126_v41, %v1082_v42  ;;  %v1171_v9 = vrot.slane %v2579_v23, 2  ;;  %v1157_v8 = vld [vmem:[#allocation5 + $0x8] sm:$0xfc] }
 0x119   : > { %v990_v10 = vpop.permute.xlu0 %989  ;;  %v1173_v18 = vrot.slane %v2583_v58, 2  ;;  %v1175_v11 = vrot.slane %v2674_v46, 2  ;;  %v1139_v30 = vsel %vm325_vm2, %v1131_v34, 0.0  ;;  %v1140_v52 = vsel %vm325_vm2, %v1132_v62, 0.0 }
 0x11a   : > { %v1005_v26 = vsel %vm950_vm11, %v990_v10, %v1000_v56  ;;  %v1010_v36 = vsel %vm950_vm11, %v1000_v56, %v990_v10  ;;  %v1167_v23 = vsel %vm480_vm1, %v1165_v27, %v1166_v22  ;;  %v1170_v58 = vsel %vm480_vm1, %v1168_v21, %v1169_v53  ;;  %v1158_v27 = vld [vmem:[#allocation5] sm:$0xfc] }
 0x11b   : > { %1019 = vst [vmem:[#allocation5 + $0x38] sm:$0xff] %v1005_v26  ;;  %1020 = vst [vmem:[#allocation5 + $0x18] sm:$0xff] %v1010_v36  ;;  %v1172_v19 = vsel %vm480_vm1, %v1166_v22, %v1171_v9  ;;  %v1174_v63 = vsel %vm480_vm1, %v1169_v53, %v1173_v18  ;;  %v2769_v57 = vadd.f32 %v1139_v30, %v1137_v60  ;;  %v1177_v38 = vrot.slane %v2678_v35, 2 }
 0x11c   : > { %v2771_v37 = vadd.f32 %v1140_v52, %v1138_v24  ;;  %v2776_v34 = vsel %vm326_vm7, %v1133_v25, 0.0  ;;  %v2780_v55 = vsel %vm326_vm7, %v1134_v33, 0.0  ;;  %v1176_v62 = vsel %vm480_vm1, %v1171_v9, %v1175_v11  ;;  %v1594_v52 = vld [vmem:[#allocation2 + $0x8] sm:$0xff] }
 0x11d   : > { %v1203_v44 = vrot.slane %v1157_v8, 2  ;;  %v2784_v42 = vmul.f32 %v2710_v54, %v1167_v23  ;;  %v2787_v22 = vmul.f32 %v2713_v32, %v1170_v58  ;;  %v2790_v21 = vmul.f32 %v2716_v29, %v1172_v19 }
 0x11e   : > { %v1029_v47 = vld [vmem:[#allocation4 + $0x30] sm:$0x1]  ;;  %v1030_v12 = vld [vmem:[#allocation4 + $0x18] sm:$0x1]  ;;  %v2793_v53 = vmul.f32 %v2719_v61, %v1174_v63  ;;  %v1178_v24 = vsel %vm480_vm1, %v1173_v18, %v1177_v38  ;;  %v1195_v9 = vmul.f32 %v2727_v3, %v1176_v62  ;;  %v1204_v54 = vrot.slane %v2648_v17, 2  ;;  %v1595_v3 = vld [vmem:[#allocation2 + $0x20] sm:$0xff] }
 0x11f   : > { %v1155_v41 = vld [vmem:[#allocation4 + $0x30] sm:$0x3]  ;;  %v1065_v56 = vrot.slane %v1029_v47, 1  ;;  %v1067_v25 = vrot.slane %v1030_v12, 1  ;;  %v1156_v60 = vld [vmem:[#allocation4 + $0x18] sm:$0x3]  ;;  %v1196_v46 = vmul.f32 %v1593_v20, %v1178_v24 }
 0x120   : > { %v1179_v10 = vrot.slane %v1155_v41, 2  ;;  %v1181_v33 = vrot.slane %v1156_v60, 2  ;;  %v1206_v26 = vrot.slane %v1158_v27, 2  ;;  %v1207_v61 = vrot.slane %v2652_v5, 2  ;;  %v1596_v47 = vld [vmem:[#allocation3 + $0x30] sm:$0xff]  ;;  %v1597_v41 = vld [vmem:[#allocation3 + $0x18] sm:$0xff] }
 0x121   : > { %v1066_v32 = vsel %vm365_vm0, %v1061_v0, %v1065_v56  ;;  %v1068_v29 = vsel %vm365_vm0, %v1063_v6, %v1067_v25  ;;  %v1209_v36 = vrot.slane %v2639_v49, 2  ;;  %v1205_v6 = vsel %vm480_vm1, %v1203_v44, %v1204_v54 }
 0x122   : > { %v1039_v18 = vld [vmem:[#allocation5 + $0x38] sm:$0x1]  ;;  %v1083_v8 = vmul.f32 %v1594_v52, %v1066_v32  ;;  %v1084_v23 = vmul.f32 %v1595_v3, %v1068_v29  ;;  %v1180_v58 = vsel %vm480_vm1, %v1175_v11, %v1179_v10  ;;  %v1182_v35 = vsel %vm480_vm1, %v1177_v38, %v1181_v33 }
 0x123   : > { %v1040_v30 = vld [vmem:[#allocation5 + $0x18] sm:$0x1]  ;;  %v1109_v19 = vrot.slane %v1039_v18, 1  ;;  %v1208_v5 = vsel %vm480_vm1, %v1206_v26, %v1207_v61  ;;  %v1210_v49 = vsel %vm480_vm1, %v1204_v54, %v1209_v36  ;;  %v1211_v27 = vrot.slane %v2643_v28, 2 }
 0x124   : > { %v1159_v17 = vld [vmem:[#allocation5 + $0x38] sm:$0x3]  ;;  %v1111_v0 = vrot.slane %v1040_v30, 1  ;;  %v1213_v62 = vrot.slane %v2704_v50, 2  ;;  %v1215_v38 = vrot.slane %v2708_v2, 2  ;;  %v1229_v24 = vadd.f32 %v2693_v39, %v1205_v6 }
 0x125   : > { %v1160_v63 = vld [vmem:[#allocation5 + $0x18] sm:$0x3]  ;;  %v1110_v11 = vsel %vm365_vm0, %v1105_v13, %v1109_v19  ;;  %v1217_v44 = vrot.slane %v1159_v17, 2  ;;  %v1212_v25 = vsel %vm480_vm1, %v1207_v61, %v1211_v27  ;;  %v1230_v2 = vadd.f32 %v2696_v4, %v1208_v5 }
 0x126   : > { %v1112_v20 = vsel %vm365_vm0, %v1107_v45, %v1111_v0  ;;  %v1127_v12 = vadd.f32 %v1596_v47, %v1110_v11  ;;  %v1214_v28 = vsel %vm480_vm1, %v1209_v36, %v1213_v62  ;;  %v1216_v60 = vsel %vm480_vm1, %v1211_v27, %v1215_v38 }
 0x127   : > { %v1128_v56 = vadd.f32 %v1597_v41, %v1112_v20  ;;  %v1218_v50 = vsel %vm480_vm1, %v1213_v62, %v1217_v44  ;;  %v1219_v13 = vrot.slane %v1160_v63, 2  ;;  %v1231_v33 = vadd.f32 %v2687_v14, %v1210_v49 }
 0x128   : > { %v1135_v10 = vmul.f32 %v1127_v12, %v1083_v8  ;;  %v1232_v26 = vadd.f32 %v2699_v1, %v1212_v25  ;;  %v1233_v32 = vadd.f32 %v2740_v40, %v1214_v28  ;;  %v1234_v29 = vadd.f32 %v2743_v16, %v1216_v60 }
 0x129   : > { %v1136_v45 = vmul.f32 %v1128_v56, %v1084_v23  ;;  %v1220_v54 = vsel %vm480_vm1, %v1215_v38, %v1219_v13  ;;  %v1197_v61 = vmul.f32 %v1594_v52, %v1180_v58  ;;  %v1198_v36 = vmul.f32 %v1595_v3, %v1182_v35 }
 0x12a   : > { %v1235_v18 = vadd.f32 %v1596_v47, %v1218_v50  ;;  %v1236_v30 = vadd.f32 %v1597_v41, %v1220_v54  ;;  %v1143_v39 = vsel %vm327_vm9, %v1135_v10, 0.0  ;;  %v1237_v14 = vmul.f32 %v1229_v24, %v2784_v42 }
 0x12b   : > { %v1144_v4 = vsel %vm327_vm9, %v1136_v45, 0.0  ;;  %v1238_v8 = vmul.f32 %v1230_v2, %v2787_v22  ;;  %v1239_v1 = vmul.f32 %v1231_v33, %v2790_v21  ;;  %v1240_v40 = vmul.f32 %v1232_v26, %v2793_v53 }
 0x12c   : > { %v1241_v23 = vmul.f32 %v1233_v32, %v1195_v9  ;;  %v1242_v16 = vmul.f32 %v1234_v29, %v1196_v46  ;;  %v1243_v52 = vmul.f32 %v1235_v18, %v1197_v61  ;;  %v1244_v3 = vmul.f32 %v1236_v30, %v1198_v36 }
 0x12d   : > { %v1245_v17 = vsel %vm328_vm5, %v1237_v14, 0.0  ;;  %v1246_v58 = vsel %vm328_vm5, %v1238_v8, 0.0  ;;  %v1247_v19 = vsel %vm329_vm3, %v1239_v1, 0.0  ;;  %v1248_v42 = vsel %vm329_vm3, %v1240_v40, 0.0 }
 0x12e   : > { %v1249_v22 = vsel %vm330_vm8, %v1241_v23, 0.0  ;;  %v1250_v21 = vsel %vm330_vm8, %v1242_v16, 0.0  ;;  %v1147_v53 = vadd.f32 %v2769_v57, %v2776_v34  ;;  %v1148_v9 = vadd.f32 %v2771_v37, %v2780_v55 }
 0x12f   : > { %v1253_v59 = vadd.f32 %v1247_v19, %v1245_v17  ;;  %v1254_v46 = vadd.f32 %v1248_v42, %v1246_v58  ;;  %v1251_v0 = vsel %vm331_vm10, %v1243_v52, 0.0  ;;  %v1252_v7 = vsel %vm331_vm10, %v1244_v3, 0.0 }
 0x130   : > { %v1149_v35 = vadd.f32 %v1147_v53, %v1143_v39  ;;  %v1150_v6 = vadd.f32 %v1148_v9, %v1144_v4  ;;  %vm1262_vm13 = vcmp.lt.s32.totalorder %v2621_v15, 254 }
 0x131   : > { %v1255_v63 = vadd.f32 %v1253_v59, %v1249_v22  ;;  %v1256_v5 = vadd.f32 %v1254_v46, %v1250_v21 }
 0x133   : > { %v1257_v51 = vadd.f32 %v1255_v63, %v1251_v0  ;;  %v1258_v49 = vadd.f32 %v1256_v5, %v1252_v7 }
 0x135   : > { %v1259_v57 = vadd.f32 %v1257_v51, %v1149_v35  ;;  %v1260_v34 = vadd.f32 %v1258_v49, %v1150_v6 }
 0x137   : > { %v1264_v37 = vsel %vm1262_vm13, %v1260_v34, 0.0  ;;  %v1265_v55 = vadd.f32 %v1259_v57, %v2657_v31 }
 0x138   : > { %v1266_v27 = vadd.f32 %v1264_v37, %v2667_v43 }
 0x13a   : > { %v1278_v62 = vadd.f32 %v1266_v27, %v1265_v55 }
 0x13c   : > { %1279 = vadd.xlane.f32.xlu0 %v1278_v62 }
 0x1c5   : > { %v1280_v48 = vpop.xlane.xlu0 %1279 }
 0x1c6   : > { %v1281_v11 = vrot.slane %v1280_v48, 4 }
 0x1c8   : > { %v1282_v20 = vadd.f32 %v1281_v11, %v1280_v48 }
 0x1ca   : > { %v1283_v38 = vrot.slane %v1282_v20, 2 }
 0x1cc   : > { %v1284_v44 = vadd.f32 %v1283_v38, %v1282_v20 }
 0x1ce   : > { %v1285_v47 = vrot.slane %v1284_v44, 1 }
 0x1d0   : > { %v1286_v12 = vadd.f32 %v1285_v47, %v1284_v44 }
 0x1d2   : > { %1441 = vpush %v1286_v12 }
 0x203   : > { %s1442_s26 = spop %1441 }
 0x204   : > { %s1288_s12 = ssub.f32 0.0, %s1442_s26 }
 0x206   : > { %s1291_s28 = smul.f32 0.015625, %s1288_s12 }
 0x208   : > { %v1292_v15 = vstv %s1291_s28 }
 0x209   : > { %1293 = vst [vmem:[%s236_s4] sm:$0xff] %v1292_v15 }
 0x20a   : > { %1667 = shalt.err (!%p1664_p5)
}
 0x20b   : > { %s1668_s8 = scalar_lea.hbm %s2867_s0, 128  ;;  %s1672_s7 = scalar_lea.hbm %s2928_s2, 256 }
 0x20c   : > { %p1669_p3 = scmp.ne.s32.totalorder %s2867_s0, %s1668_s8  ;;  %p1673_p11 = scmp.lt.s32.totalorder %s2867_s0, %s2928_s2 }
 0x20d   : > { %p1674_p2 = scmp.lt.s32.totalorder %s1672_s7, %s1668_s8 }
 0x20e   : > { %p1670_p4 = pnand %p1669_p3, %p2957_p8 }
 0x20f   : > { %p1675_p1 = por %p1674_p2, %p1673_p11 }
 0x210   : > { %p1671_p13 = pneg %p1670_p4 }
 0x212   : > { %p1676_p7 = pnand %p1675_p1, %p1671_p13 }
 0x214   : > { %1679 = shalt.err (!%p1676_p7)
}
 0x215   : > { %1447 = dma.vmem_to_hbm [thread:$0]  (%p2957_p8), %s1309_s29, 128, %s2867_s0, %s1295_s21  }
 0x216 PF: > { %s1320_s28 = sand.u32 1, %s1742_s9   ;;  %p2958_p0 = scmp.ne.s32.totalorder %s2949_s27, 0 }
 0x217   : > { %p2959_p10 = scmp.ge.s32.totalorder %s1786_s20, 2  ;;  %s1321_s19 = scalar_lea.sflag [#allocation9], %s1320_s28 }
 0x219   : > { %p1457_p9 = pnand %p2959_p10, %p2958_p0 }
 0x21b   : > { %p1458_p6 = pneg %p1457_p9 }
 0x21d   : > { %1737 = dma.done.wait (%p1458_p6), %s1321_s19, 128  }
 0x21e   : > { %1739 = vsyncadd (%p1458_p6), %s1321_s19, 4294967168  ;;  %s21_s20 = sadd.s32 1, %s1786_s20   ;;  %s2960_s18 = sld [smem:[#allocation16_spill]] }
 0x21f   : > { %p18_p12 = scmp.ge.s32.totalorder %s21_s20, 4   ;;  %s2961_s19 = sld [smem:[#allocation17_spill]] }
 0x220   : > { %s2962_s9 = smov %s1746_s10  ;;  %s2963_s10 = smov %s1750_s11 }
 0x221   : > { %s2964_s11 = smov %s1961_s3  ;;  %s2965_s12 = smov %s1758_s13 }
 0x222   : > { %s2966_s13 = smov %s1762_s14  ;;  %s2967_s14 = smov %s1964_s6 }
 0x223   : > { %s2968_s15 = smov %s1770_s16  ;;  %s2969_s16 = smov %s1774_s17 }
 0x224   : > { %s2970_s17 = smov %s1895_s30  ;;  %20 = sbr.rel (!%p18_p12) target bundleno = 13 (0xd), region = 94 }
 0x229   :  { %1326 = vsyncpa [#allocation8], 1 }
 0x22a   :  { %1328 = vsyncpa [#allocation8 + $0x1], 1 }
 0x22b   :  { %1329 = vsyncpa [#allocation11], 1 }
 0x22c   :  { %1331 = vsyncpa [#allocation11 + $0x1], 1 }
 0x22d   :  { %1332 = vsyncpa [#allocation9], 1 }
 0x22e   :  { %1334 = vsyncpa [#allocation9 + $0x1], 1 }

</bundles_post_ra>
